<compile_context>
chip_gen: v6e
topology: v6e:2x2x1
jax: 0.10.0
libtpu: 0.0.40
codegen_flags: <defaults>
</compile_context>

<pallas_src>
import functools

import jax
import jax.numpy as jnp
from jax import lax
from jax.experimental import pallas as pl
from jax.experimental.pallas import tpu as pltpu

K = 4    # conv kernel size of every layer
PAD = 1  # conv padding of every layer
NEG_SLOPE = 0.2
BN_EPS = 1e-5


# ----------------------------------------------------------------------------
# Pallas kernel: flat-plane VALID stride-1 conv + bias + optional LeakyReLU
# ----------------------------------------------------------------------------
def _conv_flat_kernel(x_ref, w_ref, b_ref, o_ref, *, offsets, m_out, leaky):
    # x_ref: (1, flat_len, cin)  bf16   spatially-flattened padded input
    # w_ref: (k*k, cin, tc)      bf16   per-tap weight matrices (BN scale folded)
    # b_ref: (1, tc)             f32    per-channel bias (BN shift / conv bias)
    # o_ref: (1, m_out, tc)             flat output rows (p = oy*win + ox)
    tc = o_ref.shape[-1]
    acc = jnp.zeros((m_out, tc), jnp.float32)
    for t, d in enumerate(offsets):
        patch = x_ref[0, d:d + m_out, :]                   # (m_out, cin) static slice
        acc = acc + jnp.dot(patch, w_ref[t],
                            preferred_element_type=jnp.float32)
    y = acc + b_ref[...]                                   # bias broadcast, once
    if leaky:
        y = jnp.maximum(y, NEG_SLOPE * y)                  # LeakyReLU(0.2)
    o_ref[0] = y.astype(o_ref.dtype)


def _conv_flat_pallas(x_flat, w_eff, bias2d, offsets, m_out, leaky, out_dtype):
    """x_flat: (B, flat_len, cin) bf16; w_eff: (k*k, cin, cout) bf16."""
    B, flat_len, cin = x_flat.shape
    kk, cin_w, cout = w_eff.shape
    assert cin_w == cin

    # Output-channel tile: 256 fills the v6e/v7x MXU (two pushes on v5e's
    # 128-wide MXU, still fine); smaller couts use the full (lane-padded) dim.
    if cout <= 256:
        tc = cout
    else:
        tc = 256 if cout % 256 == 0 else 128
    n_ct = cout // tc

    kernel = functools.partial(_conv_flat_kernel, offsets=tuple(offsets),
                               m_out=m_out, leaky=leaky)

    return pl.pallas_call(
        kernel,
        out_shape=jax.ShapeDtypeStruct((B, m_out, cout), out_dtype),
        grid_spec=pltpu.PrefetchScalarGridSpec(
            num_scalar_prefetch=0,
            # batch innermost -> the (k*k, cin, tc) weight tile stays resident
            # across the batch; input slab is re-fetched per step (it is the
            # smaller object on the weight-bound deep layers).
            grid=(n_ct, B),
            in_specs=[
                pl.BlockSpec((1, flat_len, cin), lambda j, b: (b, 0, 0)),
                pl.BlockSpec((kk, cin, tc), lambda j, b: (0, 0, j)),
                pl.BlockSpec((1, tc), lambda j, b: (0, j)),
            ],
            out_specs=pl.BlockSpec((1, m_out, tc), lambda j, b: (b, 0, j)),
        ),
        compiler_params=pltpu.CompilerParams(
            dimension_semantics=("parallel", "parallel")),
    )(x_flat, w_eff, bias2d)


# ----------------------------------------------------------------------------
# Layer wrapper: fold BN, de-stride via space-to-depth, flatten, call kernel
# ----------------------------------------------------------------------------
def _conv_block(x_nhwc, w_oihw, scale, bias, stride, leaky, out_dtype):
    """x_nhwc: (B,H,W,Cin) -> (B,Ho,Wo,Cout)."""
    B, H, W, cin = x_nhwc.shape
    cout = w_oihw.shape[0]

    # (O,I,4,4) -> (4,4,I,O), BN per-channel scale folded, bf16 for the MXU.
    w_hwio = (jnp.transpose(w_oihw, (2, 3, 1, 0))
              * scale[None, None, None, :]).astype(jnp.bfloat16)
    xp = jnp.pad(x_nhwc.astype(jnp.bfloat16),
                 ((0, 0), (PAD, PAD), (PAD, PAD), (0, 0)))

    if stride == 2:
        assert H % 2 == 0 and W % 2 == 0, "stride-2 layers need even H, W"
        hin, win = (H + 2 * PAD) // 2, (W + 2 * PAD) // 2
        # space-to-depth: stride-2 4x4 conv == dense 2x2 conv over 4*Cin chans.
        x_eff = (xp.reshape(B, hin, 2, win, 2, cin)
                   .transpose(0, 1, 3, 2, 4, 5)
                   .reshape(B, hin, win, 4 * cin))
        w_eff = (w_hwio.reshape(2, 2, 2, 2, cin, cout)     # (qy, ry, qx, rx, ci, co)
                       .transpose(0, 2, 1, 3, 4, 5)        # (qy, qx, ry, rx, ci, co)
                       .reshape(4, 4 * cin, cout))
        k_eff, cin_eff = 2, 4 * cin
    else:
        hin, win = H + 2 * PAD, W + 2 * PAD
        x_eff = xp
        w_eff = w_hwio.reshape(K * K, cin, cout)
        k_eff, cin_eff = K, cin

    ho, wo = hin - k_eff + 1, win - k_eff + 1

    # Flatten the spatial plane.  Output flat row p = oy*win + ox; tap (ky,kx)
    # reads flat index p + ky*win + kx.  Rows with ox >= wo are garbage and are
    # sliced off below; the flat input is zero-padded so the garbage rows'
    # reads stay in bounds.
    m_out = ho * win
    offsets = [ky * win + kx for ky in range(k_eff) for kx in range(k_eff)]
    need = m_out + offsets[-1]
    x_flat = x_eff.reshape(B, hin * win, cin_eff)
    if need > x_flat.shape[1]:
        x_flat = jnp.pad(x_flat, ((0, 0), (0, need - x_flat.shape[1]), (0, 0)))

    bias2d = bias.reshape(1, cout).astype(jnp.float32)
    out = _conv_flat_pallas(x_flat, w_eff, bias2d, offsets, m_out, leaky,
                            out_dtype)
    return out.reshape(B, ho, win, cout)[:, :, :wo, :]


def _bn_fold(layer):
    """Return per-channel (scale, bias) for the layer's affine epilogue."""
    cout = layer["w"].shape[0]
    if "gamma" in layer:                                   # inference-mode BN
        inv = layer["gamma"] * lax.rsqrt(layer["var"] + BN_EPS)
        return inv, layer["beta"] - layer["mean"] * inv
    bias = layer.get("bias", jnp.zeros((cout,), jnp.float32))
    return jnp.ones((cout,), jnp.float32), bias


def patch_discriminator(x_nchw, layers):
    """Forward pass of PatchDiscriminator. x: (B, C, H, W) -> (B, 1, H', W')."""
    x = jnp.transpose(x_nchw, (0, 2, 3, 1))                # NHWC
    n = len(layers)
    for i, layer in enumerate(layers):
        scale, bias = _bn_fold(layer)
        w = layer["w"]
        cout = w.shape[0]
        # Lane-dense output for tiny couts (the head's Cout=1): pad the output
        # channels to 128 with zero weights/bias, slice back afterwards.
        pad_c = 128 - cout if cout < 64 else 0
        if pad_c:
            w = jnp.pad(w, ((0, pad_c), (0, 0), (0, 0), (0, 0)))
            scale = jnp.pad(scale, (0, pad_c), constant_values=1.0)
            bias = jnp.pad(bias, (0, pad_c))
        out_dtype = jnp.float32 if i == n - 1 else jnp.bfloat16
        x = _conv_block(x, w, scale, bias, layer["stride"], layer["leaky"],
                        out_dtype)
        if pad_c:
            x = x[..., :cout]
    return jnp.transpose(x, (0, 3, 1, 2))                  # back to NCHW


# ----------------------------------------------------------------------------
# Parameters + pure-JAX reference
# ----------------------------------------------------------------------------
def init_params(key, in_channels=6, features=64):
    specs = [
        # (cin, cout, stride, batchnorm, leaky, conv_bias)
        (in_channels, features, 2, False, True, False),
        (features, features * 2, 2, True, True, False),
        (features * 2, features * 4, 2, True, True, False),
        (features * 4, features * 8, 1, True, True, False),
        (features * 8, 1, 1, False, False, True),
    ]
    layers = []
    for cin, cout, stride, bn, leaky, has_bias in specs:
        key, kw, kb, kg, kbe, km, kv = jax.random.split(key, 7)
        w = jax.random.normal(kw, (cout, cin, K, K), jnp.float32)
        w = w * (2.0 / (cin * K * K)) ** 0.5
        layer = {"w": w, "stride": stride, "leaky": leaky}
        if bn:
            layer["gamma"] = 1.0 + 0.1 * jax.random.normal(kg, (cout,), jnp.float32)
            layer["beta"] = 0.1 * jax.random.normal(kbe, (cout,), jnp.float32)
            layer["mean"] = 0.1 * jax.random.normal(km, (cout,), jnp.float32)
            layer["var"] = (1.0 + 0.1 * jax.random.normal(kv, (cout,), jnp.float32)) ** 2
        if has_bias:
            layer["bias"] = 0.1 * jax.random.normal(kb, (cout,), jnp.float32)
        layers.append(layer)
    return layers


def _reference(x_nchw, layers):
    """Pure-JAX f32 reference mirroring the PyTorch forward (eval-mode BN)."""
    y = x_nchw.astype(jnp.float32)
    for layer in layers:
        s = layer["stride"]
        y = lax.conv_general_dilated(
            y, layer["w"], (s, s), ((PAD, PAD), (PAD, PAD)),
            dimension_numbers=("NCHW", "OIHW", "NCHW"),
            precision=lax.Precision.HIGHEST)
        scale, bias = _bn_fold(layer)
        y = y * scale.reshape(1, -1, 1, 1) + bias.reshape(1, -1, 1, 1)
        if layer["leaky"]:
            y = jnp.where(y >= 0, y, NEG_SLOPE * y)
    return y


if __name__ == "__main__":
    key = jax.random.PRNGKey(0)
    key, kx = jax.random.split(key)

    B, IN_CH, FEATURES, H, W = 2, 6, 64, 32, 32
    x = jax.random.normal(kx, (B, IN_CH, H, W), dtype=jnp.float32)
    layers = init_params(key, in_channels=IN_CH, features=FEATURES)

    out = patch_discriminator(x, layers)
    out = jax.block_until_ready(out)

    ref = _reference(x, layers)
    assert out.shape == ref.shape, f"shape {out.shape} vs {ref.shape}"
    err = float(jnp.max(jnp.abs(out - ref)))
    scale = float(jnp.max(jnp.abs(ref)))
    # bf16 inputs / f32 accumulation: allow a slightly wider relative band.
    assert err <= 4e-2 * scale + 1e-4, f"max abs err {err} (ref scale {scale})"

    print("KERNEL_OK")
</pallas_src>

<mosaic_0001>
module attributes {stable_mosaic.version = 11 : i64} {
  func.func @_conv_flat_kernel(%arg0: i32, %arg1: i32, %arg2: memref<1x290x24xbf16, #tpu.memory_space<vmem>>, %arg3: memref<4x24x64xbf16, #tpu.memory_space<vmem>>, %arg4: memref<1x64xf32, #tpu.memory_space<vmem>>, %arg5: memref<1x272x64xbf16, #tpu.memory_space<vmem>>) attributes {dimension_semantics = [#tpu.dimension_semantics<parallel>, #tpu.dimension_semantics<parallel>], iteration_bounds = array<i64: 1, 2>, scalar_prefetch = 0 : i64, scratch_operands = 0 : i64, tpu.core_type = #tpu.core_type<tc>, window_params = [{transform_indices = @transform_0, window_bounds = array<i64: 1, 290, 24>}, {transform_indices = @transform_1, window_bounds = array<i64: 4, 24, 64>}, {transform_indices = @transform_2, window_bounds = array<i64: 1, 64>}, {transform_indices = @transform_3, window_bounds = array<i64: 1, 272, 64>}]} {
    %cst = arith.constant 0.000000e+00 : f32
    %0 = vector.broadcast %cst : f32 to vector<272x64xf32>
    %c0 = arith.constant 0 : index
    %c0_0 = arith.constant 0 : index
    %c0_1 = arith.constant 0 : index
    %1 = vector.load %arg2[%c0, %c0_0, %c0_1] : memref<1x290x24xbf16, #tpu.memory_space<vmem>>, vector<1x272x24xbf16>
    %2 = vector.shape_cast %1 : vector<1x272x24xbf16> to vector<272x24xbf16>
    %c0_2 = arith.constant 0 : index
    %c0_3 = arith.constant 0 : index
    %c0_4 = arith.constant 0 : index
    %3 = vector.load %arg3[%c0_2, %c0_3, %c0_4] : memref<4x24x64xbf16, #tpu.memory_space<vmem>>, vector<1x24x64xbf16>
    %4 = vector.shape_cast %3 : vector<1x24x64xbf16> to vector<24x64xbf16>
    %cst_5 = arith.constant dense<0.000000e+00> : vector<272x64xf32>
    %5 = tpu.matmul %2, %4, %cst_5 {dimension_numbers = #tpu.dot_dimension_numbers<[1], [0], [0], [1], [0, 0, 1, 1], [], []>} : vector<272x24xbf16>, vector<24x64xbf16>, vector<272x64xf32> -> vector<272x64xf32>
    %6 = arith.addf %0, %5 : vector<272x64xf32>
    %c0_6 = arith.constant 0 : index
    %c1 = arith.constant 1 : index
    %c0_7 = arith.constant 0 : index
    %7 = vector.load %arg2[%c0_6, %c1, %c0_7] : memref<1x290x24xbf16, #tpu.memory_space<vmem>>, vector<1x272x24xbf16>
    %8 = vector.shape_cast %7 : vector<1x272x24xbf16> to vector<272x24xbf16>
    %c1_8 = arith.constant 1 : index
    %c0_9 = arith.constant 0 : index
    %c0_10 = arith.constant 0 : index
    %9 = vector.load %arg3[%c1_8, %c0_9, %c0_10] : memref<4x24x64xbf16, #tpu.memory_space<vmem>>, vector<1x24x64xbf16>
    %10 = vector.shape_cast %9 : vector<1x24x64xbf16> to vector<24x64xbf16>
    %cst_11 = arith.constant dense<0.000000e+00> : vector<272x64xf32>
    %11 = tpu.matmul %8, %10, %cst_11 {dimension_numbers = #tpu.dot_dimension_numbers<[1], [0], [0], [1], [0, 0, 1, 1], [], []>} : vector<272x24xbf16>, vector<24x64xbf16>, vector<272x64xf32> -> vector<272x64xf32>
    %12 = arith.addf %6, %11 : vector<272x64xf32>
    %c0_12 = arith.constant 0 : index
    %c17 = arith.constant 17 : index
    %c0_13 = arith.constant 0 : index
    %13 = vector.load %arg2[%c0_12, %c17, %c0_13] : memref<1x290x24xbf16, #tpu.memory_space<vmem>>, vector<1x272x24xbf16>
    %14 = vector.shape_cast %13 : vector<1x272x24xbf16> to vector<272x24xbf16>
    %c2 = arith.constant 2 : index
    %c0_14 = arith.constant 0 : index
    %c0_15 = arith.constant 0 : index
    %15 = vector.load %arg3[%c2, %c0_14, %c0_15] : memref<4x24x64xbf16, #tpu.memory_space<vmem>>, vector<1x24x64xbf16>
    %16 = vector.shape_cast %15 : vector<1x24x64xbf16> to vector<24x64xbf16>
    %cst_16 = arith.constant dense<0.000000e+00> : vector<272x64xf32>
    %17 = tpu.matmul %14, %16, %cst_16 {dimension_numbers = #tpu.dot_dimension_numbers<[1], [0], [0], [1], [0, 0, 1, 1], [], []>} : vector<272x24xbf16>, vector<24x64xbf16>, vector<272x64xf32> -> vector<272x64xf32>
    %18 = arith.addf %12, %17 : vector<272x64xf32>
    %c0_17 = arith.constant 0 : index
    %c18 = arith.constant 18 : index
    %c0_18 = arith.constant 0 : index
    %19 = vector.load %arg2[%c0_17, %c18, %c0_18] : memref<1x290x24xbf16, #tpu.memory_space<vmem>>, vector<1x272x24xbf16>
    %20 = vector.shape_cast %19 : vector<1x272x24xbf16> to vector<272x24xbf16>
    %c3 = arith.constant 3 : index
    %c0_19 = arith.constant 0 : index
    %c0_20 = arith.constant 0 : index
    %21 = vector.load %arg3[%c3, %c0_19, %c0_20] : memref<4x24x64xbf16, #tpu.memory_space<vmem>>, vector<1x24x64xbf16>
    %22 = vector.shape_cast %21 : vector<1x24x64xbf16> to vector<24x64xbf16>
    %cst_21 = arith.constant dense<0.000000e+00> : vector<272x64xf32>
    %23 = tpu.matmul %20, %22, %cst_21 {dimension_numbers = #tpu.dot_dimension_numbers<[1], [0], [0], [1], [0, 0, 1, 1], [], []>} : vector<272x24xbf16>, vector<24x64xbf16>, vector<272x64xf32> -> vector<272x64xf32>
    %24 = arith.addf %18, %23 : vector<272x64xf32>
    %c0_22 = arith.constant 0 : index
    %c0_23 = arith.constant 0 : index
    %25 = vector.load %arg4[%c0_22, %c0_23] : memref<1x64xf32, #tpu.memory_space<vmem>>, vector<1x64xf32>
    %26 = vector.broadcast %25 : vector<1x64xf32> to vector<272x64xf32>
    %27 = arith.addf %24, %26 : vector<272x64xf32>
    %cst_24 = arith.constant 2.000000e-01 : f32
    %28 = vector.broadcast %cst_24 : f32 to vector<272x64xf32>
    %29 = arith.mulf %28, %27 : vector<272x64xf32>
    %30 = arith.maximumf %27, %29 : vector<272x64xf32>
    %31 = arith.truncf %30 : vector<272x64xf32> to vector<272x64xbf16>
    %c0_25 = arith.constant 0 : index
    %c0_26 = arith.constant 0 : index
    %c0_27 = arith.constant 0 : index
    %32 = vector.load %arg5[%c0_25, %c0_26, %c0_27] : memref<1x272x64xbf16, #tpu.memory_space<vmem>>, vector<1x272x64xbf16>
    %33 = vector.shape_cast %32 : vector<1x272x64xbf16> to vector<272x64xbf16>
    %34 = vector.shape_cast %31 : vector<272x64xbf16> to vector<1x272x64xbf16>
    tpu.vector_store %arg5[%c0_25, %c0_26, %c0_27], %34 {strides = array<i32>} : memref<1x272x64xbf16, #tpu.memory_space<vmem>>, vector<1x272x64xbf16>,
    return
  }
  func.func @transform_0(%arg0: i32, %arg1: i32) -> (i32, i32, i32) {
    %c0_i32 = arith.constant 0 : i32
    %c0_i32_0 = arith.constant 0 : i32
    %c0_i32_1 = arith.constant 0 : i32
    return %arg1, %c0_i32, %c0_i32_0 : i32, i32, i32
  }
  func.func @transform_1(%arg0: i32, %arg1: i32) -> (i32, i32, i32) {
    %c0_i32 = arith.constant 0 : i32
    %c0_i32_0 = arith.constant 0 : i32
    %c0_i32_1 = arith.constant 0 : i32
    return %c0_i32, %c0_i32_0, %arg0 : i32, i32, i32
  }
  func.func @transform_2(%arg0: i32, %arg1: i32) -> (i32, i32) {
    %c0_i32 = arith.constant 0 : i32
    %c0_i32_0 = arith.constant 0 : i32
    return %c0_i32, %arg0 : i32, i32
  }
  func.func @transform_3(%arg0: i32, %arg1: i32) -> (i32, i32, i32) {
    %c0_i32 = arith.constant 0 : i32
    %c0_i32_0 = arith.constant 0 : i32
    return %arg1, %c0_i32, %arg0 : i32, i32, i32
  }
}

</mosaic_0001>

<bundles_post_ra>
// kernel: tpu_custom_call.1
= control target key start
LH: loop header
LB: loop body
LE: loop exit
PB: predicated region body
PF: predicated region fallthrough
CT: control target
= control target key end

     0   :  { %s2856_s12 = smov 0   ;;  %s2858_s13 = smov 0   ;;  %s3435_s0 = inlined_call_operand.vmem [shape: bf16[2,290,24], index: 0, kind: input, shape index: {}]   ;;  %s3436_s1 = inlined_call_operand.vmem [shape: bf16[4,24,64], index: 1, kind: input, shape index: {}]   ;;  %s3437_s2 = inlined_call_operand.vmem [shape: f32[1,64], index: 2, kind: input, shape index: {}]   ;;  %s3438_s3 = inlined_call_operand.vmem [shape: bf16[2,272,64], index: 3, kind: output, shape index: {}]  }
   0x1   :  { %s2860_s14 = smov 0  }
   0x2 LB: > { %s22_s15 = sadd.s32 1, %s2828_s13  ;;  %p2177_p0 = scmp.ge.s32.totalorder %s2832_s14, 1  ;;  %s2832_s14 = sphi %s2860_s14, %s13_s14   ;;  %s2828_s13 = sphi %s2858_s13, %s3440_s13   ;;  %s2824_s12 = sphi %s2856_s12, %s3439_s12  }
   0x3   : > { %p23_p1 = scmp.ge.s32.totalorder %s22_s15, 2  ;;  %p168_p2 = scmp.lt.s32.totalorder %s2832_s14, 3 }
   0x5   : > { %s3442_s15 = smov (%p23_p1, %s22_s15), 0  ;;  %p169_p3 = pnand %p2177_p0, %p168_p2 }
   0x6   : > { %p202_p4 = scmp.lt.s32.totalorder (!%p169_p3), %s2824_s12, 1 }
   0x7   : > { %172 = sbr.rel (%p169_p3) target bundleno = 499 (0x1f3), region = 32 }
   0xc   : > { %vm555_vm0 = vcmask 1043456   ;;  %v2765_v0 = vld [vmem:[%s3436_s1 + $0x8] ss:$0 sps:$4 sm:$0xff]   ;;  %v2834_v1 = vmov 0.0   ;;  %v2766_v2 = vld [vmem:[%s3436_s1 + $0x14] ss:$0 sps:$4 sm:$0xff]  }
   0xd   : > { %2521 = vmatprep.subr.bf16.mxu1 %v2834_v1  ;;  %2449 = vmatprep.subr.bf16.mxu0 %v2834_v1  ;;  %v772_v3 = vsel %vm555_vm0, %v2765_v0, 0  ;;  %v2767_v4 = vld [vmem:[%s3436_s1] sm:$0xff]   ;;  %v557_v5 = vsel %vm555_vm0, %v2766_v2, 0  ;;  %vm2835_vm1 = vmmov 0   ;;  %v2768_v6 = vld [vmem:[%s3436_s1 + $0xc] sm:$0xff]   ;;  %s3444_s12 = smov (!%p202_p4, %s2824_s12), 1 }
   0xe   : > { %2522 = vmatpush3.bf16.msra.mxu1 %v772_v3  ;;  %2525 = vmatprep.mubr.msk.bf16.mxu1 %vm2835_vm1, %v2834_v1  ;;  %v2772_v7 = vld [vmem:[%s3436_s1 + $0x2c] ss:$0 sps:$4 sm:$0xff]   ;;  %s2737_s26 = smul.u32 148, %s3444_s12  ;;  %vm503_vm2 = vcmask 195584   ;;  %v2771_v11 = vld [vmem:[%s3436_s1 + $0x20] ss:$0 sps:$4 sm:$0xff]  }
   0xf   : > { %2450 = vmatpush3.bf16.msra.mxu0 %v557_v5  ;;  %2523 = vmatprep.subr.bf16.mxu1 %v2834_v1  ;;  %v1581_v9 = vsel %vm555_vm0, %v2772_v7, 0  ;;  %v2782_v16 = vld [vmem:[%s3436_s1 + $0x24] sm:$0xff]   ;;  %vm353_vm3 = vsmask.f32 7424  ;;  %v1271_v22 = vsel %vm555_vm0, %v2771_v11, 0  ;;  %v2781_v27 = vld [vmem:[%s3436_s1 + $0x18] sm:$0xff]  }
  0x10   : > { %2451 = vmatprep.subr.bf16.mxu0 %v2834_v1  ;;  %2453 = vmatprep.mubr.msk.bf16.mxu0 %vm2835_vm1, %v2834_v1  ;;  %s2906_s29 = scalar_lea.vmem %s3435_s0, %s2737_s26  ;;  %vm1484_vm4 = vcmask 1046528   ;;  %s2738_s11 = smul.u32 136, %s3444_s12  ;;  %vm2031_vm5 = vcmask 519168  }
  0x11   : > { %v2769_v8 = vld [vmem:[%s2906_s29] sm:$0xff]   ;;  %v2770_v10 = vld [vmem:[%s2906_s29 + $0x8] sm:$0xff]   ;;  %v2773_v15 = vld [vmem:[%s2906_s29 + $0x10] sm:$0xff]  }
  0x12   : > { %2524 = vmatpush3.bf16.msra.mxu1 %v2767_v4  ;;  %v355_v12 = vshrl.u32 %v2769_v8, 16  ;;  %v357_v13 = vshll.u32 %v2769_v8, 16  ;;  %v362_v14 = vshll.u32 %v2770_v10, 16  ;;  %v366_v20 = vshrl.u32 %v2770_v10, 16  ;;  %v2774_v26 = vld [vmem:[%s2906_s29 + $0x18] sm:$0xff]   ;;  %v2775_v33 = vld [vmem:[%s2906_s29 + $0x20] sm:$0xff]   ;;  %s3293_s18 = scalar_lea.vmem %s3438_s3, %s2738_s11 }
  0x13   : > { %2452 = vmatpush3.bf16.msra.mxu0 %v2768_v6  ;;  %2665 = vmatprep.subr.bf16.mxu1 %v2834_v1  ;;  %v370_v21 = vshll.u32 %v2773_v15, 16  ;;  %v374_v29 = vshrl.u32 %v2773_v15, 16  ;;  %v378_v30 = vshll.u32 %v2774_v26, 16  ;;  %v382_v35 = vshrl.u32 %v2774_v26, 16  ;;  %v2776_v39 = vld [vmem:[%s2906_s29 + $0x28] sm:$0xff]   ;;  %v2777_v43 = vld [vmem:[%s2906_s29 + $0x30] sm:$0xff]  }
  0x14   : > { %2593 = vmatprep.subr.bf16.mxu0 %v2834_v1  ;;  %v359_v17 = vrot.slane %v357_v13, 1  ;;  %v364_v18 = vrot.slane %v362_v14, 1  ;;  %v386_v36 = vshll.u32 %v2775_v33, 16  ;;  %v390_v41 = vshrl.u32 %v2775_v33, 16  ;;  %v2778_v51 = vld [vmem:[%s2906_s29 + $0x38] sm:$0xff]   ;;  %v2779_v57 = vld [vmem:[%s2906_s29 + $0x40] sm:$0xff]  }
  0x15   : > { %2526 = vmatmul.mubr.msk.bf16.vlgmr.msra.gmra.mxu1 %vm503_vm2, %v2769_v8  ;;  %v372_v25 = vrot.slane %v370_v21, 1  ;;  %v380_v32 = vrot.slane %v378_v30, 1  ;;  %v394_v42 = vshll.u32 %v2776_v39, 16  ;;  %v398_v46 = vshrl.u32 %v2776_v39, 16  ;;  %v2780_v63 = vld [vmem:[%s2906_s29 + $0x48] sm:$0xff]   ;;  %v2783_v6 = vld [vmem:[%s2906_s29 + $0x50] sm:$0xff]  }
  0x16   : > { %2666 = vmatpush3.bf16.msra.mxu1 %v1581_v9  ;;  %2529 = vmatprep.mubr.msk.bf16.mxu1 %vm2835_vm1, %v2834_v1  ;;  %v360_v19 = vor.u32 %v359_v17, %v355_v12  ;;  %v368_v24 = vor.u32 %v366_v20, %v364_v18  ;;  %v388_v38 = vrot.slane %v386_v36, 1  ;;  %v402_v47 = vshll.u32 %v2777_v43, 16  ;;  %v2784_v12 = vld [vmem:[%s2906_s29 + $0x58] sm:$0xff]   ;;  %v2787_v30 = vld [vmem:[%s2906_s29 + $0x70] sm:$0xff]  }
  0x17   : > { %2667 = vmatprep.subr.bf16.mxu1 %v2834_v1  ;;  %v376_v31 = vor.u32 %v374_v29, %v372_v25  ;;  %v384_v37 = vor.u32 %v382_v35, %v380_v32  ;;  %v396_v45 = vrot.slane %v394_v42, 1  ;;  %v406_v53 = vshrl.u32 %v2777_v43, 16  ;;  %v2788_v36 = vld [vmem:[%s2906_s29 + $0x78] sm:$0xff]   ;;  %v2789_v42 = vld [vmem:[%s2906_s29 + $0x80] sm:$0xff]  }
  0x18   : > { %v365_v23 = vsel %vm353_vm3, %v360_v19, %v364_v18  ;;  %v373_v28 = vsel %vm353_vm3, %v368_v24, %v372_v25  ;;  %v392_v44 = vor.u32 %v390_v41, %v388_v38  ;;  %v404_v50 = vrot.slane %v402_v47, 1  ;;  %v2785_v18 = vld [vmem:[%s2906_s29 + $0x60] sm:$0xff]   ;;  %v2786_v24 = vld [vmem:[%s2906_s29 + $0x68] sm:$0xff]  }
  0x19   : > { %2454 = vmatmul.mubr.msk.bf16.vlgmr.msra.gmra.mxu0 %vm503_vm2, %v365_v23  ;;  %v381_v34 = vsel %vm353_vm3, %v376_v31, %v380_v32  ;;  %v389_v40 = vsel %vm353_vm3, %v384_v37, %v388_v38  ;;  %v400_v49 = vor.u32 %v398_v46, %v396_v45  ;;  %v410_v54 = vshll.u32 %v2778_v51, 16 }
  0x1a   : > { %2668 = vmatpush3.bf16.msra.mxu1 %v2782_v16  ;;  %2594 = vmatpush3.bf16.msra.mxu0 %v1271_v22  ;;  %v397_v48 = vsel %vm353_vm3, %v392_v44, %v396_v45  ;;  %v408_v55 = vor.u32 %v406_v53, %v404_v50  ;;  %v414_v59 = vshrl.u32 %v2778_v51, 16  ;;  %v418_v60 = vshll.u32 %v2779_v57, 16 }
  0x1b   : > { %2457 = vmatprep.mubr.msk.bf16.mxu0 %vm2835_vm1, %v2834_v1  ;;  %2595 = vmatprep.subr.bf16.mxu0 %v2834_v1  ;;  %v405_v52 = vsel %vm353_vm3, %v400_v49, %v404_v50  ;;  %v412_v56 = vrot.slane %v410_v54, 1  ;;  %v422_v2 = vshrl.u32 %v2779_v57, 16  ;;  %v426_v3 = vshll.u32 %v2780_v63, 16  ;;  %v943_v49 = vld [vmem:[%s2906_s29 + $0x8] sm:$0xf] }
  0x1c   : > { %v420_v62 = vrot.slane %v418_v60, 1  ;;  %v430_v8 = vshrl.u32 %v2780_v63, 16  ;;  %v434_v9 = vshll.u32 %v2783_v6, 16  ;;  %v438_v14 = vshrl.u32 %v2783_v6, 16  ;;  %v944_v50 = vld [vmem:[%s2906_s29 + $0xc] sm:$0xf] }
  0x1d   : > { %2530 = vmatmul.mubr.msk.bf16.gmra.mxu1 %vm503_vm2, %v2770_v10  ;;  %v413_v58 = vsel %vm353_vm3, %v408_v55, %v412_v56  ;;  %v416_v61 = vor.u32 %v414_v59, %v412_v56  ;;  %v428_v5 = vrot.slane %v426_v3, 1  ;;  %v446_v20 = vshrl.u32 %v2784_v12, 16  ;;  %v2792_v56 = vld [vmem:[%s2906_s29 + $0x10] sm:$0xff]  }
  0x1e   : > { %2533 = vmatprep.mubr.msk.bf16.mxu1 %vm2835_vm1, %v2834_v1  ;;  %2596 = vmatpush3.bf16.msra.mxu0 %v2781_v27  ;;  %v424_v4 = vor.u32 %v422_v2, %v420_v62  ;;  %v436_v11 = vrot.slane %v434_v9, 1  ;;  %v450_v21 = vshll.u32 %v2785_v18, 16  ;;  %v458_v27 = vshll.u32 %v2786_v24, 16 }
  0x1f   : > { %v421_v0 = vsel %vm353_vm3, %v416_v61, %v420_v62  ;;  %v432_v10 = vor.u32 %v430_v8, %v428_v5  ;;  %v462_v32 = vshrl.u32 %v2786_v24, 16  ;;  %v470_v38 = vshrl.u32 %v2787_v30, 16 }
  0x20   : > { %v429_v7 = vsel %vm353_vm3, %v424_v4, %v428_v5  ;;  %v440_v16 = vor.u32 %v438_v14, %v436_v11  ;;  %v452_v23 = vrot.slane %v450_v21, 1  ;;  %v460_v29 = vrot.slane %v458_v27, 1  ;;  %v2794_v5 = vld [vmem:[%s2906_s29 + $0x18] sm:$0xff]   ;;  %v2796_v21 = vld [vmem:[%s2906_s29 + $0x28] sm:$0xff]  }
  0x21   : > { %2458 = vmatmul.mubr.msk.bf16.gmra.mxu0 %vm503_vm2, %v373_v28  ;;  %v437_v13 = vsel %vm353_vm3, %v432_v10, %v436_v11  ;;  %v478_v44 = vshrl.u32 %v2788_v36, 16  ;;  %v482_v45 = vshll.u32 %v2789_v42, 16  ;;  %v486_v53 = vshrl.u32 %v2789_v42, 16 }
  0x22   : > { %2461 = vmatprep.mubr.msk.bf16.mxu0 %vm2835_vm1, %v2834_v1  ;;  %v2242_v55 = vcombine.low %v943_v49, %v944_v50  ;;  %v1486_v62 = vrot.slane %v2792_v56, 1  ;;  %v1078_v3 = vshll.u32 %v2792_v56, 16  ;;  %v1488_v8 = vrot.slane %v2794_v5, 1 }
  0x23   : > { %v484_v47 = vrot.slane %v482_v45, 1  ;;  %v1082_v10 = vshrl.u32 %v2792_v56, 16  ;;  %v1086_v11 = vshll.u32 %v2794_v5, 16  ;;  %v1102_v27 = vshll.u32 %v2796_v21, 16  ;;  %v2799_v45 = vld [vmem:[%s2906_s29 + $0x40] sm:$0xff]  }
  0x24   : > { %v1073_v60 = vshll.u32 %v2242_v55, 16 }
  0x25   : > { %2534 = vmatmul.mubr.msk.bf16.gmra.mxu1 %vm503_vm2, %v2773_v15  ;;  %v442_v15 = vshll.u32 %v2784_v12, 16 }
  0x26   : > { %2537 = vmatprep.mubr.msk.bf16.mxu1 %vm2835_vm1, %v2834_v1  ;;  %v1075_v2 = vrot.slane %v1073_v60, 1 }
  0x27   : > { %v444_v17 = vrot.slane %v442_v15, 1  ;;  %v1088_v15 = vrot.slane %v1086_v11, 1 }
  0x29   : > { %2462 = vmatmul.mubr.msk.bf16.gmra.mxu0 %vm503_vm2, %v381_v34  ;;  %v445_v19 = vsel %vm353_vm3, %v440_v16, %v444_v17  ;;  %v448_v22 = vor.u32 %v446_v20, %v444_v17  ;;  %v464_v34 = vor.u32 %v462_v32, %v460_v29 }
  0x2a   : > { %2465 = vmatprep.mubr.msk.bf16.mxu0 %vm2835_vm1, %v2834_v1 }
  0x2b   : > { %v453_v25 = vsel %vm353_vm3, %v448_v22, %v452_v23 }
  0x2d   : > { %2538 = vmatmul.mubr.msk.bf16.gmra.mxu1 %vm503_vm2, %v2774_v26  ;;  %v454_v26 = vshrl.u32 %v2785_v18, 16 }
  0x2e   : > { %2541 = vmatprep.mubr.msk.bf16.mxu1 %vm2835_vm1, %v2834_v1 }
  0x2f   : > { %v456_v28 = vor.u32 %v454_v26, %v452_v23 }
  0x31   : > { %2466 = vmatmul.mubr.msk.bf16.gmra.mxu0 %vm503_vm2, %v389_v40  ;;  %v461_v31 = vsel %vm353_vm3, %v456_v28, %v460_v29  ;;  %v2797_v29 = vld [vmem:[%s2906_s29 + $0x30] sm:$0xff]  }
  0x32   : > { %2469 = vmatprep.mubr.msk.bf16.mxu0 %vm2835_vm1, %v2834_v1  ;;  %v1494_v32 = vrot.slane %v2797_v29, 1 }
  0x35   : > { %2542 = vmatmul.mubr.msk.bf16.gmra.mxu1 %vm503_vm2, %v2775_v33  ;;  %v466_v33 = vshll.u32 %v2787_v30, 16 }
  0x36   : > { %2545 = vmatprep.mubr.msk.bf16.mxu1 %vm2835_vm1, %v2834_v1 }
  0x37   : > { %v468_v35 = vrot.slane %v466_v33, 1 }
  0x39   : > { %2470 = vmatmul.mubr.msk.bf16.gmra.mxu0 %vm503_vm2, %v397_v48  ;;  %v469_v37 = vsel %vm353_vm3, %v464_v34, %v468_v35  ;;  %v472_v40 = vor.u32 %v470_v38, %v468_v35  ;;  %v2790_v48 = vld [vmem:[%s2906_s29 + $0x88] ss:$0 sps:$4 sm:$0x11]   ;;  %v1106_v34 = vshrl.u32 %v2796_v21, 16  ;;  %v1110_v35 = vshll.u32 %v2797_v29, 16 }
  0x3a   : > { %2473 = vmatprep.mubr.msk.bf16.mxu0 %vm2835_vm1, %v2834_v1  ;;  %v490_v54 = vshll.u32 %v2790_v48, 16  ;;  %v1498_v48 = vrot.slane %v2799_v45, 1 }
  0x3c   : > { %v492_v59 = vrot.slane %v490_v54, 1 }
  0x3d   : > { %2546 = vmatmul.mubr.msk.bf16.gmra.mxu1 %vm503_vm2, %v2776_v39  ;;  %v474_v39 = vshll.u32 %v2788_v36, 16 }
  0x3e   : > { %2549 = vmatprep.mubr.msk.bf16.mxu1 %vm2835_vm1, %v2834_v1 }
  0x3f   : > { %v476_v41 = vrot.slane %v474_v39, 1  ;;  %v1112_v39 = vrot.slane %v1110_v35, 1 }
  0x41   : > { %2474 = vmatmul.mubr.msk.bf16.gmra.mxu0 %vm503_vm2, %v405_v52  ;;  %v480_v46 = vor.u32 %v478_v44, %v476_v41 }
  0x42   : > { %2477 = vmatprep.mubr.msk.bf16.mxu0 %vm2835_vm1, %v2834_v1 }
  0x43   : > { %v485_v52 = vsel %vm353_vm3, %v480_v46, %v484_v47 }
  0x45   : > { %2550 = vmatmul.mubr.msk.bf16.gmra.mxu1 %vm503_vm2, %v2777_v43  ;;  %v477_v43 = vsel %vm353_vm3, %v472_v40, %v476_v41 }
  0x46   : > { %2553 = vmatprep.mubr.msk.bf16.mxu1 %vm2835_vm1, %v2834_v1 }
  0x49   : > { %2478 = vmatmul.mubr.msk.bf16.gmra.mxu0 %vm503_vm2, %v413_v58  ;;  %v488_v58 = vor.u32 %v486_v53, %v484_v47  ;;  %v2800_v53 = vld [vmem:[%s2906_s29 + $0x48] sm:$0xff]  }
  0x4a   : > { %2481 = vmatprep.mubr.msk.bf16.mxu0 %vm2835_vm1, %v2834_v1  ;;  %v1500_v56 = vrot.slane %v2800_v53, 1 }
  0x4c   : > { %v1501_v60 = vsel %vm1484_vm4, %v1498_v48, %v1500_v56 }
  0x4d   : > { %2554 = vmatmul.mubr.msk.bf16.gmra.mxu1 %vm503_vm2, %v2778_v51  ;;  %v1476_v51 = vld [vmem:[%s2906_s29 + $0x8] sm:$0xe] }
  0x4e   : > { %2557 = vmatprep.mubr.msk.bf16.mxu1 %vm2835_vm1, %v2834_v1 }
  0x51   : > { %2482 = vmatmul.mubr.msk.bf16.gmra.mxu0 %vm503_vm2, %v421_v0  ;;  %v1071_v0 = vshrl.u32 %v2242_v55, 16 }
  0x52   : > { %2485 = vmatprep.mubr.msk.bf16.mxu0 %vm2835_vm1, %v2834_v1 }
  0x55   : > { %2558 = vmatmul.mubr.msk.bf16.gmra.mxu1 %vm503_vm2, %v2779_v57  ;;  %v2282_v57 = vcombine.low %v1476_v51, %v944_v50  ;;  %v1126_v51 = vshll.u32 %v2799_v45, 16 }
  0x56   : > { %2561 = vmatprep.mubr.msk.bf16.mxu1 %vm2835_vm1, %v2834_v1 }
  0x57   : > { %v1485_v61 = vrot.slane %v2282_v57, 1  ;;  %v1128_v55 = vrot.slane %v1126_v51, 1 }
  0x59   : > { %2486 = vmatmul.mubr.msk.bf16.gmra.mxu0 %vm503_vm2, %v429_v7  ;;  %v1487_v4 = vsel %vm1484_vm4, %v1485_v61, %v1486_v62  ;;  %v1080_v7 = vrot.slane %v1078_v3, 1  ;;  %v2801_v61 = vld [vmem:[%s2906_s29 + $0x50] sm:$0xff]  }
  0x5a   : > { %2489 = vmatprep.mubr.msk.bf16.mxu0 %vm2835_vm1, %v2834_v1 }
  0x5b   : > { %v1084_v14 = vor.u32 %v1082_v10, %v1080_v7 }
  0x5d   : > { %2562 = vmatmul.mubr.msk.bf16.gmra.mxu1 %vm503_vm2, %v2780_v63  ;;  %v493_v63 = vsel %vm353_vm3, %v488_v58, %v492_v59  ;;  %v1089_v17 = vsel %vm353_vm3, %v1084_v14, %v1088_v15  ;;  %v1130_v58 = vshrl.u32 %v2799_v45, 16  ;;  %v1134_v59 = vshll.u32 %v2800_v53, 16  ;;  %v2804_v45 = vld [vmem:[%s2906_s29 + $0x68] sm:$0xff]  }
  0x5e   : > { %2565 = vmatprep.mubr.msk.bf16.mxu1 %vm2835_vm1, %v2834_v1 }
  0x61   : > { %2490 = vmatmul.mubr.msk.bf16.gmra.mxu0 %vm503_vm2, %v437_v13  ;;  %v2795_v13 = vld [vmem:[%s2906_s29 + $0x20] sm:$0xff]  }
  0x62   : > { %2493 = vmatprep.mubr.msk.bf16.mxu0 %vm2835_vm1, %v2834_v1  ;;  %v1490_v16 = vrot.slane %v2795_v13, 1  ;;  %v1098_v26 = vshrl.u32 %v2795_v13, 16 }
  0x64   : > { %v1491_v20 = vsel %vm1484_vm4, %v1488_v8, %v1490_v16 }
  0x65   : > { %2566 = vmatmul.mubr.msk.bf16.gmra.mxu1 %vm503_vm2, %v2783_v6  ;;  %v1076_v6 = vor.u32 %v1075_v2, %v1071_v0  ;;  %v1136_v0 = vrot.slane %v1134_v59, 1  ;;  %v1502_v2 = vrot.slane %v2801_v61, 1 }
  0x66   : > { %2569 = vmatprep.mubr.msk.bf16.mxu1 %vm2835_vm1, %v2834_v1 }
  0x67   : > { %v1081_v9 = vsel %vm353_vm3, %v1076_v6, %v1080_v7  ;;  %v1138_v6 = vshrl.u32 %v2800_v53, 16  ;;  %v1142_v7 = vshll.u32 %v2801_v61, 16  ;;  %v1508_v53 = vrot.slane %v2804_v45, 1 }
  0x69   : > { %2494 = vmatmul.mubr.msk.bf16.gmra.mxu0 %vm503_vm2, %v445_v19  ;;  %v1094_v19 = vshll.u32 %v2795_v13, 16  ;;  %v1140_v14 = vor.u32 %v1138_v6, %v1136_v0 }
  0x6a   : > { %2497 = vmatprep.mubr.msk.bf16.mxu0 %vm2835_vm1, %v2834_v1 }
  0x6b   : > { %v1096_v23 = vrot.slane %v1094_v19, 1 }
  0x6d   : > { %2570 = vmatmul.mubr.msk.bf16.gmra.mxu1 %vm503_vm2, %v2784_v12  ;;  %v1489_v12 = vsel %vm1484_vm4, %v1486_v62, %v1488_v8  ;;  %v1503_v8 = vsel %vm1484_vm4, %v1500_v56, %v1502_v2 }
  0x6e   : > { %2573 = vmatprep.mubr.msk.bf16.mxu1 %vm2835_vm1, %v2834_v1 }
  0x71   : > { %2498 = vmatmul.mubr.msk.bf16.gmra.mxu0 %vm503_vm2, %v453_v25 }
  0x72   : > { %2501 = vmatprep.mubr.msk.bf16.mxu0 %vm2835_vm1, %v2834_v1 }
  0x75   : > { %2574 = vmatmul.mubr.msk.bf16.gmra.mxu1 %vm503_vm2, %v2785_v18  ;;  %v1090_v18 = vshrl.u32 %v2794_v5, 16 }
  0x76   : > { %2577 = vmatprep.mubr.msk.bf16.mxu1 %vm2835_vm1, %v2834_v1 }
  0x77   : > { %v1092_v22 = vor.u32 %v1090_v18, %v1088_v15  ;;  %v1144_v15 = vrot.slane %v1142_v7, 1 }
  0x79   : > { %2502 = vmatmul.mubr.msk.bf16.gmra.mxu0 %vm503_vm2, %v461_v31  ;;  %v1097_v25 = vsel %vm353_vm3, %v1092_v22, %v1096_v23  ;;  %v1104_v31 = vrot.slane %v1102_v27, 1  ;;  %v1145_v22 = vsel %vm353_vm3, %v1140_v14, %v1144_v15  ;;  %v2803_v27 = vld [vmem:[%s2906_s29 + $0x60] sm:$0xff]  }
  0x7a   : > { %2505 = vmatprep.mubr.msk.bf16.mxu0 %vm2835_vm1, %v2834_v1  ;;  %v1506_v35 = vrot.slane %v2803_v27, 1  ;;  %v1162_v59 = vshrl.u32 %v2803_v27, 16 }
  0x7b   : > { %v1108_v38 = vor.u32 %v1106_v34, %v1104_v31 }
  0x7d   : > { %2578 = vmatmul.mubr.msk.bf16.gmra.mxu1 %vm503_vm2, %v2786_v24  ;;  %v1492_v24 = vrot.slane %v2796_v21, 1  ;;  %v1113_v41 = vsel %vm353_vm3, %v1108_v38, %v1112_v39 }
  0x7e   : > { %2581 = vmatprep.mubr.msk.bf16.mxu1 %vm2835_vm1, %v2834_v1 }
  0x7f   : > { %v1493_v28 = vsel %vm1484_vm4, %v1490_v16, %v1492_v24 }
  0x81   : > { %2506 = vmatmul.mubr.msk.bf16.gmra.mxu0 %vm503_vm2, %v469_v37  ;;  %v2798_v37 = vld [vmem:[%s2906_s29 + $0x38] sm:$0xff]  }
  0x82   : > { %2509 = vmatprep.mubr.msk.bf16.mxu0 %vm2835_vm1, %v2834_v1  ;;  %v1496_v40 = vrot.slane %v2798_v37, 1  ;;  %v1122_v50 = vshrl.u32 %v2798_v37, 16 }
  0x84   : > { %v1497_v44 = vsel %vm1484_vm4, %v1494_v32, %v1496_v40 }
  0x85   : > { %2582 = vmatmul.mubr.msk.bf16.gmra.mxu1 %vm503_vm2, %v2787_v30  ;;  %v1100_v30 = vor.u32 %v1098_v26, %v1096_v23  ;;  %v1146_v23 = vshrl.u32 %v2801_v61, 16 }
  0x86   : > { %2585 = vmatprep.mubr.msk.bf16.mxu1 %vm2835_vm1, %v2834_v1 }
  0x87   : > { %v1105_v33 = vsel %vm353_vm3, %v1100_v30, %v1104_v31 }
  0x89   : > { %2510 = vmatmul.mubr.msk.bf16.gmra.mxu0 %vm503_vm2, %v477_v43  ;;  %v1118_v43 = vshll.u32 %v2798_v37, 16 }
  0x8a   : > { %2513 = vmatprep.mubr.msk.bf16.mxu0 %vm2835_vm1, %v2834_v1 }
  0x8b   : > { %v1120_v47 = vrot.slane %v1118_v43, 1 }
  0x8d   : > { %2586 = vmatmul.mubr.msk.bf16.gmra.mxu1 %vm503_vm2, %v2788_v36  ;;  %v1495_v36 = vsel %vm1484_vm4, %v1492_v24, %v1494_v32  ;;  %v1124_v54 = vor.u32 %v1122_v50, %v1120_v47  ;;  %v1148_v32 = vor.u32 %v1146_v23, %v1144_v15  ;;  %v1170_v15 = vshrl.u32 %v2804_v45, 16 }
  0x8e   : > { %2589 = vmatprep.mubr.msk.bf16.mxu1 %vm2835_vm1, %v2834_v1 }
  0x8f   : > { %v1129_v57 = vsel %vm353_vm3, %v1124_v54, %v1128_v55 }
  0x91   : > { %2514 = vmatmul.mubr.msk.bf16.gmra.mxu0 %vm503_vm2, %v485_v52  ;;  %v1499_v52 = vsel %vm1484_vm4, %v1496_v40, %v1498_v48 }
  0x92   : > { %2517 = vmatprep.mubr.msk.bf16.mxu0 %vm2835_vm1, %v2834_v1 }
  0x95   : > { %2590 = vmatmul.mubr.msk.bf16.gmra.mxu1 %vm503_vm2, %v2789_v42  ;;  %v1114_v42 = vshrl.u32 %v2797_v29, 16 }
  0x96   : > { %2669 = vmatprep.mubr.msk.bf16.mxu1 %vm2835_vm1, %v2834_v1 }
  0x97   : > { %v1116_v46 = vor.u32 %v1114_v42, %v1112_v39  ;;  %v1158_v42 = vshll.u32 %v2803_v27, 16 }
  0x99   : > { %2518 = vmatmul.mubr.msk.bf16.gmra.mxu0 %vm503_vm2, %v493_v63  ;;  %v1121_v49 = vsel %vm353_vm3, %v1116_v46, %v1120_v47  ;;  %v1132_v63 = vor.u32 %v1130_v58, %v1128_v55  ;;  %v1160_v51 = vrot.slane %v1158_v42, 1 }
  0x9a   : > { %2597 = vmatprep.mubr.msk.bf16.mxu0 %vm2835_vm1, %v2834_v1 }
  0x9b   : > { %v1137_v5 = vsel %vm353_vm3, %v1132_v63, %v1136_v0  ;;  %v2805_v63 = vld [vmem:[%s2906_s29 + $0x70] sm:$0xff]  }
  0x9d   : > { %2670 = vmatmul.mubr.msk.bf16.vlgmr.msra.gmra.mxu1 %vm503_vm2, %v1487_v4 }
  0x9e   : > { %2673 = vmatprep.mubr.msk.bf16.mxu1 %vm2835_vm1, %v2834_v1 }
  0xa1   : > { %2598 = vmatmul.mubr.msk.bf16.vlgmr.msra.gmra.mxu0 %vm503_vm2, %v1081_v9  ;;  %v2802_v9 = vld [vmem:[%s2906_s29 + $0x58] sm:$0xff]  }
  0xa2   : > { %2601 = vmatprep.mubr.msk.bf16.mxu0 %vm2835_vm1, %v2834_v1  ;;  %v1150_v24 = vshll.u32 %v2802_v9, 16 }
  0xa5   : > { %2674 = vmatmul.mubr.msk.bf16.gmra.mxu1 %vm503_vm2, %v1489_v12 }
  0xa6   : > { %2677 = vmatprep.mubr.msk.bf16.mxu1 %vm2835_vm1, %v2834_v1 }
  0xa9   : > { %2602 = vmatmul.mubr.msk.bf16.gmra.mxu0 %vm503_vm2, %v1089_v17  ;;  %v1504_v17 = vrot.slane %v2802_v9, 1 }
  0xaa   : > { %2605 = vmatprep.mubr.msk.bf16.mxu0 %vm2835_vm1, %v2834_v1 }
  0xab   : > { %v1505_v26 = vsel %vm1484_vm4, %v1502_v2, %v1504_v17 }
  0xad   : > { %2678 = vmatmul.mubr.msk.bf16.gmra.mxu1 %vm503_vm2, %v1491_v20 }
  0xae   : > { %2681 = vmatprep.mubr.msk.bf16.mxu1 %vm2835_vm1, %v2834_v1 }
  0xb1   : > { %2606 = vmatmul.mubr.msk.bf16.gmra.mxu0 %vm503_vm2, %v1097_v25 }
  0xb2   : > { %2609 = vmatprep.mubr.msk.bf16.mxu0 %vm2835_vm1, %v2834_v1 }
  0xb5   : > { %2682 = vmatmul.mubr.msk.bf16.gmra.mxu1 %vm503_vm2, %v1493_v28 }
  0xb6   : > { %2685 = vmatprep.mubr.msk.bf16.mxu1 %vm2835_vm1, %v2834_v1 }
  0xb9   : > { %2610 = vmatmul.mubr.msk.bf16.gmra.mxu0 %vm503_vm2, %v1105_v33  ;;  %v1152_v33 = vrot.slane %v1150_v24, 1 }
  0xba   : > { %2613 = vmatprep.mubr.msk.bf16.mxu0 %vm2835_vm1, %v2834_v1 }
  0xbb   : > { %v1153_v40 = vsel %vm353_vm3, %v1148_v32, %v1152_v33 }
  0xbd   : > { %2686 = vmatmul.mubr.msk.bf16.gmra.mxu1 %vm503_vm2, %v1495_v36 }
  0xbe   : > { %2689 = vmatprep.mubr.msk.bf16.mxu1 %vm2835_vm1, %v2834_v1 }
  0xc1   : > { %2614 = vmatmul.mubr.msk.bf16.gmra.mxu0 %vm503_vm2, %v1113_v41  ;;  %v1154_v41 = vshrl.u32 %v2802_v9, 16 }
  0xc2   : > { %2617 = vmatprep.mubr.msk.bf16.mxu0 %vm2835_vm1, %v2834_v1 }
  0xc3   : > { %v1156_v50 = vor.u32 %v1154_v41, %v1152_v33 }
  0xc5   : > { %2690 = vmatmul.mubr.msk.bf16.gmra.mxu1 %vm503_vm2, %v1497_v44  ;;  %v1507_v44 = vsel %vm1484_vm4, %v1504_v17, %v1506_v35  ;;  %v1161_v58 = vsel %vm353_vm3, %v1156_v50, %v1160_v51 }
  0xc6   : > { %2693 = vmatprep.mubr.msk.bf16.mxu1 %vm2835_vm1, %v2834_v1 }
  0xc9   : > { %2618 = vmatmul.mubr.msk.bf16.gmra.mxu0 %vm503_vm2, %v1121_v49 }
  0xca   : > { %2621 = vmatprep.mubr.msk.bf16.mxu0 %vm2835_vm1, %v2834_v1 }
  0xcd   : > { %2694 = vmatmul.mubr.msk.bf16.gmra.mxu1 %vm503_vm2, %v1499_v52 }
  0xce   : > { %2697 = vmatprep.mubr.msk.bf16.mxu1 %vm2835_vm1, %v2834_v1 }
  0xd1   : > { %2622 = vmatmul.mubr.msk.bf16.gmra.mxu0 %vm503_vm2, %v1129_v57 }
  0xd2   : > { %2625 = vmatprep.mubr.msk.bf16.mxu0 %vm2835_vm1, %v2834_v1 }
  0xd5   : > { %v808_v62 = vpop.f32.mrf.mxu1  ;;  %2698 = vmatmul.mubr.msk.bf16.gmra.mxu1 %vm503_vm2, %v1501_v60  ;;  %v1166_v60 = vshll.u32 %v2804_v45, 16 }
  0xd6   : > { %2701 = vmatprep.mubr.msk.bf16.mxu1 %vm2835_vm1, %v2834_v1 }
  0xd7   : > { %v2527_v3 = vpop.f32.mrf.mxu1  ;;  %v1168_v6 = vrot.slane %v1166_v60, 1  ;;  %v2808_v60 = vld [vmem:[%s2906_s29 + $0x88] sm:$0xff]  }
  0xd9   : > { %v811_v4 = vpop.f32.mrf.mxu1  ;;  %v593_v11 = vpop.f32.mrf.mxu0  ;;  %2626 = vmatmul.mubr.msk.bf16.gmra.mxu0 %vm503_vm2, %v1137_v5 }
  0xda   : > { %v3135_v12 = vadd.f32 %v808_v62, %v593_v11  ;;  %2629 = vmatprep.mubr.msk.bf16.mxu0 %vm2835_vm1, %v2834_v1  ;;  %v1509_v62 = vsel %vm1484_vm4, %v1506_v35, %v1508_v53  ;;  %v1178_v35 = vshrl.u32 %v2805_v63, 16 }
  0xdb   : > { %v2528_v10 = vpop.f32.mrf.mxu1  ;;  %v2455_v16 = vpop.f32.mrf.mxu0 }
  0xdc   : > { %v1174_v16 = vshll.u32 %v2805_v63, 16 }
  0xdd   : > { %v816_v13 = vpop.f32.mrf.mxu1  ;;  %2702 = vmatmul.mubr.msk.bf16.gmra.mxu1 %vm503_vm2, %v1503_v8  ;;  %v596_v19 = vpop.f32.mrf.mxu0  ;;  %v1510_v8 = vrot.slane %v2805_v63, 1 }
  0xde   : > { %2705 = vmatprep.mubr.msk.bf16.mxu1 %vm2835_vm1, %v2834_v1  ;;  %v3142_v20 = vadd.f32 %v811_v4, %v596_v19  ;;  %v1164_v4 = vor.u32 %v1162_v59, %v1160_v51  ;;  %v2806_v19 = vld [vmem:[%s2906_s29 + $0x78] sm:$0xff]  }
  0xdf   : > { %v2531_v18 = vpop.f32.mrf.mxu1  ;;  %v2456_v25 = vpop.f32.mrf.mxu0 }
  0xe0   : > { %v1169_v14 = vsel %vm353_vm3, %v1164_v4, %v1168_v6  ;;  %v1511_v18 = vsel %vm1484_vm4, %v1508_v53, %v1510_v8  ;;  %v1172_v25 = vor.u32 %v1170_v15, %v1168_v6  ;;  %v1516_v6 = vrot.slane %v2808_v60, 1 }
  0xe1   : > { %v819_v21 = vpop.f32.mrf.mxu1  ;;  %v601_v29 = vpop.f32.mrf.mxu0  ;;  %2630 = vmatmul.mubr.msk.bf16.gmra.mxu0 %vm503_vm2, %v1145_v22  ;;  %v1198_v15 = vshll.u32 %v2808_v60, 16 }
  0xe2   : > { %v3148_v30 = vadd.f32 %v816_v13, %v601_v29  ;;  %2633 = vmatprep.mubr.msk.bf16.mxu0 %vm2835_vm1, %v2834_v1 }
  0xe3   : > { %v2532_v28 = vpop.f32.mrf.mxu1  ;;  %v2459_v34 = vpop.f32.mrf.mxu0 }
  0xe4   : > { %v1512_v28 = vrot.slane %v2806_v19, 1 }
  0xe5   : > { %v824_v31 = vpop.f32.mrf.mxu1  ;;  %2706 = vmatmul.mubr.msk.bf16.gmra.mxu1 %vm503_vm2, %v1505_v26  ;;  %v604_v37 = vpop.f32.mrf.mxu0  ;;  %v1176_v26 = vrot.slane %v1174_v16, 1 }
  0xe6   : > { %2709 = vmatprep.mubr.msk.bf16.mxu1 %vm2835_vm1, %v2834_v1  ;;  %v3155_v38 = vadd.f32 %v819_v21, %v604_v37 }
  0xe7   : > { %v2535_v36 = vpop.f32.mrf.mxu1  ;;  %v2460_v43 = vpop.f32.mrf.mxu0  ;;  %v1177_v34 = vsel %vm353_vm3, %v1172_v25, %v1176_v26  ;;  %v1180_v45 = vor.u32 %v1178_v35, %v1176_v26  ;;  %v1200_v26 = vrot.slane %v1198_v15, 1 }
  0xe8   : > { %v1182_v36 = vshll.u32 %v2806_v19, 16 }
  0xe9   : > { %v827_v39 = vpop.f32.mrf.mxu1  ;;  %v609_v47 = vpop.f32.mrf.mxu0  ;;  %2634 = vmatmul.mubr.msk.bf16.gmra.mxu0 %vm503_vm2, %v1153_v40  ;;  %v2807_v40 = vld [vmem:[%s2906_s29 + $0x80] sm:$0xff]  }
  0xea   : > { %v3161_v48 = vadd.f32 %v824_v31, %v609_v47  ;;  %2637 = vmatprep.mubr.msk.bf16.mxu0 %vm2835_vm1, %v2834_v1 }
  0xeb   : > { %v2536_v46 = vpop.f32.mrf.mxu1  ;;  %v2463_v52 = vpop.f32.mrf.mxu0 }
  0xec   : > { %v1184_v46 = vrot.slane %v1182_v36, 1  ;;  %v1202_v36 = vshrl.u32 %v2808_v60, 16 }
  0xed   : > { %v832_v49 = vpop.f32.mrf.mxu1  ;;  %2710 = vmatmul.mubr.msk.bf16.gmra.mxu1 %vm503_vm2, %v1507_v44  ;;  %v612_v55 = vpop.f32.mrf.mxu0 }
  0xee   : > { %2713 = vmatprep.mubr.msk.bf16.mxu1 %vm2835_vm1, %v2834_v1  ;;  %v3168_v56 = vadd.f32 %v827_v39, %v612_v55  ;;  %v1513_v39 = vsel %vm1484_vm4, %v1510_v8, %v1512_v28  ;;  %v1186_v55 = vshrl.u32 %v2806_v19, 16 }
  0xef   : > { %v2539_v54 = vpop.f32.mrf.mxu1  ;;  %v2464_v61 = vpop.f32.mrf.mxu0 }
  0xf0   : > { %v1185_v54 = vsel %vm353_vm3, %v1180_v45, %v1184_v46 }
  0xf1   : > { %v835_v57 = vpop.f32.mrf.mxu1  ;;  %v617_v2 = vpop.f32.mrf.mxu0  ;;  %2638 = vmatmul.mubr.msk.bf16.gmra.mxu0 %vm503_vm2, %v1161_v58 }
  0xf2   : > { %v3174_v3 = vadd.f32 %v832_v49, %v617_v2  ;;  %2641 = vmatprep.mubr.msk.bf16.mxu0 %vm2835_vm1, %v2834_v1  ;;  %v1514_v49 = vrot.slane %v2807_v40, 1  ;;  %v1188_v2 = vor.u32 %v1186_v55, %v1184_v46  ;;  %v1204_v46 = vor.u32 %v1202_v36, %v1200_v26 }
  0xf3   : > { %v2540_v0 = vpop.f32.mrf.mxu1  ;;  %v2467_v7 = vpop.f32.mrf.mxu0 }
  0xf4   : > { %v1515_v59 = vsel %vm1484_vm4, %v1512_v28, %v1514_v49 }
  0xf5   : > { %v840_v5 = vpop.f32.mrf.mxu1  ;;  %2714 = vmatmul.mubr.msk.bf16.gmra.mxu1 %vm503_vm2, %v1509_v62  ;;  %v620_v10 = vpop.f32.mrf.mxu0 }
  0xf6   : > { %2717 = vmatprep.mubr.msk.bf16.mxu1 %vm2835_vm1, %v2834_v1  ;;  %v3181_v11 = vadd.f32 %v835_v57, %v620_v10  ;;  %v1190_v57 = vshll.u32 %v2807_v40, 16 }
  0xf7   : > { %v2543_v9 = vpop.f32.mrf.mxu1  ;;  %v2468_v17 = vpop.f32.mrf.mxu0 }
  0xf8   : > { %v1192_v4 = vrot.slane %v1190_v57, 1  ;;  %v1517_v17 = vsel %vm1484_vm4, %v1514_v49, %v1516_v6 }
  0xf9   : > { %v843_v13 = vpop.f32.mrf.mxu1  ;;  %v625_v22 = vpop.f32.mrf.mxu0  ;;  %2642 = vmatmul.mubr.msk.bf16.gmra.mxu0 %vm503_vm2, %v1169_v14  ;;  %v1194_v14 = vshrl.u32 %v2807_v40, 16 }
  0xfa   : > { %v3187_v23 = vadd.f32 %v840_v5, %v625_v22  ;;  %2645 = vmatprep.mubr.msk.bf16.mxu0 %vm2835_vm1, %v2834_v1 }
  0xfb   : > { %v2544_v21 = vpop.f32.mrf.mxu1  ;;  %v2471_v27 = vpop.f32.mrf.mxu0  ;;  %v1196_v25 = vor.u32 %v1194_v14, %v1192_v4 }
  0xfd   : > { %v848_v24 = vpop.f32.mrf.mxu1  ;;  %2718 = vmatmul.mubr.msk.bf16.gmra.mxu1 %vm503_vm2, %v1511_v18  ;;  %v628_v31 = vpop.f32.mrf.mxu0  ;;  %v2809_v18 = vld [vmem:[%s2906_s29 + $0x90] ss:$0 sps:$4 sm:$0x11]   ;;  %v1201_v35 = vsel %vm353_vm3, %v1196_v25, %v1200_v26 }
  0xfe   : > { %2721 = vmatprep.mubr.msk.bf16.mxu1 %vm2835_vm1, %v2834_v1  ;;  %v3194_v32 = vadd.f32 %v843_v13, %v628_v31  ;;  %v1193_v13 = vsel %vm353_vm3, %v1188_v2, %v1192_v4  ;;  %v1518_v28 = vrot.slane %v2809_v18, 1 }
  0xff   : > { %v2547_v29 = vpop.f32.mrf.mxu1  ;;  %v2472_v37 = vpop.f32.mrf.mxu0 }
 0x100   : > { %v1206_v37 = vshll.u32 %v2809_v18, 16  ;;  %v1519_v40 = vsel %vm1484_vm4, %v1516_v6, %v1518_v28 }
 0x101   : > { %v851_v33 = vpop.f32.mrf.mxu1  ;;  %v633_v42 = vpop.f32.mrf.mxu0  ;;  %2646 = vmatmul.mubr.msk.bf16.gmra.mxu0 %vm503_vm2, %v1177_v34 }
 0x102   : > { %v3200_v43 = vadd.f32 %v848_v24, %v633_v42  ;;  %2649 = vmatprep.mubr.msk.bf16.mxu0 %vm2835_vm1, %v2834_v1 }
 0x103   : > { %v2548_v41 = vpop.f32.mrf.mxu1  ;;  %v2475_v47 = vpop.f32.mrf.mxu0 }
 0x104   : > { %v1208_v47 = vrot.slane %v1206_v37, 1 }
 0x105   : > { %v856_v44 = vpop.f32.mrf.mxu1  ;;  %2722 = vmatmul.mubr.msk.bf16.gmra.mxu1 %vm503_vm2, %v1513_v39  ;;  %v636_v51 = vpop.f32.mrf.mxu0 }
 0x106   : > { %2725 = vmatprep.mubr.msk.bf16.mxu1 %vm2835_vm1, %v2834_v1  ;;  %v3207_v52 = vadd.f32 %v851_v33, %v636_v51  ;;  %v1209_v55 = vsel %vm353_vm3, %v1204_v46, %v1208_v47 }
 0x107   : > { %v2551_v50 = vpop.f32.mrf.mxu1  ;;  %v2476_v58 = vpop.f32.mrf.mxu0 }
 0x109   : > { %v859_v53 = vpop.f32.mrf.mxu1  ;;  %v641_v62 = vpop.f32.mrf.mxu0  ;;  %2650 = vmatmul.mubr.msk.bf16.gmra.mxu0 %vm503_vm2, %v1185_v54 }
 0x10a   : > { %v3213_v63 = vadd.f32 %v856_v44, %v641_v62  ;;  %2653 = vmatprep.mubr.msk.bf16.mxu0 %vm2835_vm1, %v2834_v1 }
 0x10b   : > { %v2552_v61 = vpop.f32.mrf.mxu1  ;;  %v2479_v5 = vpop.f32.mrf.mxu0 }
 0x10d   : > { %v864_v0 = vpop.f32.mrf.mxu1  ;;  %2726 = vmatmul.mubr.msk.bf16.gmra.mxu1 %vm503_vm2, %v1515_v59  ;;  %v644_v8 = vpop.f32.mrf.mxu0 }
 0x10e   : > { %2729 = vmatprep.mubr.msk.bf16.mxu1 %vm2835_vm1, %v2834_v1  ;;  %v3220_v9 = vadd.f32 %v859_v53, %v644_v8 }
 0x10f   : > { %v2555_v7 = vpop.f32.mrf.mxu1  ;;  %v2480_v16 = vpop.f32.mrf.mxu0 }
 0x111   : > { %v867_v10 = vpop.f32.mrf.mxu1  ;;  %v649_v21 = vpop.f32.mrf.mxu0  ;;  %2654 = vmatmul.mubr.msk.bf16.gmra.mxu0 %vm503_vm2, %v1193_v13 }
 0x112   : > { %v3226_v22 = vadd.f32 %v864_v0, %v649_v21  ;;  %2657 = vmatprep.mubr.msk.bf16.mxu0 %vm2835_vm1, %v2834_v1 }
 0x113   : > { %v2556_v19 = vpop.f32.mrf.mxu1  ;;  %v2483_v27 = vpop.f32.mrf.mxu0 }
 0x115   : > { %v872_v24 = vpop.f32.mrf.mxu1  ;;  %2730 = vmatmul.mubr.msk.bf16.gmra.mxu1 %vm503_vm2, %v1517_v17  ;;  %v652_v31 = vpop.f32.mrf.mxu0 }
 0x116   : > { %2733 = vmatprep.mubr.msk.bf16.mxu1 %vm2835_vm1, %v2834_v1  ;;  %v3233_v33 = vadd.f32 %v867_v10, %v652_v31 }
 0x117   : > { %v2559_v29 = vpop.f32.mrf.mxu1  ;;  %v2484_v39 = vpop.f32.mrf.mxu0 }
 0x119   : > { %v875_v34 = vpop.f32.mrf.mxu1  ;;  %v657_v42 = vpop.f32.mrf.mxu0  ;;  %2658 = vmatmul.mubr.msk.bf16.gmra.mxu0 %vm503_vm2, %v1201_v35 }
 0x11a   : > { %v3238_v44 = vadd.f32 %v872_v24, %v657_v42  ;;  %2661 = vmatprep.mubr.msk.bf16.mxu0 %vm2835_vm1, %v2834_v1 }
 0x11b   : > { %v2560_v41 = vpop.f32.mrf.mxu1  ;;  %v2487_v49 = vpop.f32.mrf.mxu0 }
 0x11d   : > { %v880_v45 = vpop.f32.mrf.mxu1  ;;  %2734 = vmatmul.mubr.msk.bf16.gmra.mxu1 %vm503_vm2, %v1519_v40  ;;  %v660_v51 = vpop.f32.mrf.mxu0 }
 0x11e   : > { %v3243_v53 = vadd.f32 %v875_v34, %v660_v51 }
 0x11f   : > { %v2563_v50 = vpop.f32.mrf.mxu1  ;;  %v2488_v57 = vpop.f32.mrf.mxu0 }
 0x121   : > { %v883_v54 = vpop.f32.mrf.mxu1  ;;  %v665_v59 = vpop.f32.mrf.mxu0  ;;  %2662 = vmatmul.mubr.msk.bf16.gmra.mxu0 %vm503_vm2, %v1209_v55 }
 0x122   : > { %v3247_v60 = vadd.f32 %v880_v45, %v665_v59 }
 0x123   : > { %v2564_v58 = vpop.f32.mrf.mxu1  ;;  %v2491_v62 = vpop.f32.mrf.mxu0 }
 0x125   : > { %v888_v61 = vpop.f32.mrf.mxu1  ;;  %v668_v0 = vpop.f32.mrf.mxu0 }
 0x126   : > { %v3249_v2 = vadd.f32 %v883_v54, %v668_v0 }
 0x127   : > { %v2567_v1 = vpop.f32.mrf.mxu1  ;;  %v2492_v5 = vpop.f32.mrf.mxu0 }
 0x129   : > { %v891_v4 = vpop.f32.mrf.mxu1  ;;  %v673_v7 = vpop.f32.mrf.mxu0 }
 0x12a   : > { %v3251_v8 = vadd.f32 %v888_v61, %v673_v7 }
 0x12b   : > { %v2568_v6 = vpop.f32.mrf.mxu1  ;;  %v2495_v13 = vpop.f32.mrf.mxu0 }
 0x12d   : > { %v896_v10 = vpop.f32.mrf.mxu1  ;;  %v676_v15 = vpop.f32.mrf.mxu0 }
 0x12e   : > { %v3253_v16 = vadd.f32 %v891_v4, %v676_v15 }
 0x12f   : > { %v2571_v14 = vpop.f32.mrf.mxu1  ;;  %v2496_v18 = vpop.f32.mrf.mxu0 }
 0x131   : > { %v899_v17 = vpop.f32.mrf.mxu1  ;;  %v681_v21 = vpop.f32.mrf.mxu0 }
 0x132   : > { %v3255_v24 = vadd.f32 %v896_v10, %v681_v21 }
 0x133   : > { %v2572_v19 = vpop.f32.mrf.mxu1  ;;  %v2499_v26 = vpop.f32.mrf.mxu0 }
 0x135   : > { %v904_v25 = vpop.f32.mrf.mxu1  ;;  %v684_v28 = vpop.f32.mrf.mxu0 }
 0x136   : > { %v3257_v29 = vadd.f32 %v899_v17, %v684_v28 }
 0x137   : > { %v2575_v27 = vpop.f32.mrf.mxu1  ;;  %v2500_v34 = vpop.f32.mrf.mxu0 }
 0x139   : > { %v907_v31 = vpop.f32.mrf.mxu1  ;;  %v689_v36 = vpop.f32.mrf.mxu0 }
 0x13a   : > { %v3259_v37 = vadd.f32 %v904_v25, %v689_v36 }
 0x13b   : > { %v2576_v35 = vpop.f32.mrf.mxu1  ;;  %v2503_v40 = vpop.f32.mrf.mxu0 }
 0x13d   : > { %v912_v39 = vpop.f32.mrf.mxu1  ;;  %v692_v42 = vpop.f32.mrf.mxu0 }
 0x13e   : > { %v3261_v45 = vadd.f32 %v907_v31, %v692_v42 }
 0x13f   : > { %v2579_v41 = vpop.f32.mrf.mxu1  ;;  %v2504_v47 = vpop.f32.mrf.mxu0 }
 0x141   : > { %v915_v46 = vpop.f32.mrf.mxu1  ;;  %v697_v50 = vpop.f32.mrf.mxu0 }
 0x142   : > { %v3263_v51 = vadd.f32 %v912_v39, %v697_v50 }
 0x143   : > { %v2580_v49 = vpop.f32.mrf.mxu1  ;;  %v2507_v55 = vpop.f32.mrf.mxu0 }
 0x145   : > { %v920_v54 = vpop.f32.mrf.mxu1  ;;  %v700_v58 = vpop.f32.mrf.mxu0 }
 0x146   : > { %v3265_v59 = vadd.f32 %v915_v46, %v700_v58 }
 0x147   : > { %v2583_v57 = vpop.f32.mrf.mxu1  ;;  %v2508_v62 = vpop.f32.mrf.mxu0 }
 0x149   : > { %v923_v61 = vpop.f32.mrf.mxu1  ;;  %v705_v0 = vpop.f32.mrf.mxu0 }
 0x14a   : > { %v3267_v4 = vadd.f32 %v920_v54, %v705_v0 }
 0x14b   : > { %v2584_v1 = vpop.f32.mrf.mxu1  ;;  %v2511_v6 = vpop.f32.mrf.mxu0 }
 0x14d   : > { %v928_v5 = vpop.f32.mrf.mxu1  ;;  %v708_v10 = vpop.f32.mrf.mxu0 }
 0x14e   : > { %v3269_v13 = vadd.f32 %v923_v61, %v708_v10  ;;  %v3283_v61 = vld [vmem:[%s3437_s2] ss:$0 sm:$0xff] }
 0x14f   : > { %v2587_v7 = vpop.f32.mrf.mxu1  ;;  %v2512_v15 = vpop.f32.mrf.mxu0 }
 0x151   : > { %v931_v14 = vpop.f32.mrf.mxu1  ;;  %v713_v18 = vpop.f32.mrf.mxu0 }
 0x152   : > { %v3271_v19 = vadd.f32 %v928_v5, %v713_v18 }
 0x153   : > { %v2588_v17 = vpop.f32.mrf.mxu1  ;;  %v2515_v25 = vpop.f32.mrf.mxu0 }
 0x155   : > { %v936_v21 = vpop.f32.mrf.mxu1  ;;  %v716_v27 = vpop.f32.mrf.mxu0 }
 0x156   : > { %v3273_v28 = vadd.f32 %v931_v14, %v716_v27 }
 0x157   : > { %v2591_v26 = vpop.f32.mrf.mxu1  ;;  %v2516_v34 = vpop.f32.mrf.mxu0 }
 0x159   : > { %v939_v31 = vpop.f32.mrf.mxu1  ;;  %v721_v36 = vpop.f32.mrf.mxu0 }
 0x15a   : > { %v3275_v39 = vadd.f32 %v936_v21, %v721_v36 }
 0x15b   : > { %v2592_v35 = vpop.f32.mrf.mxu1  ;;  %v2519_v41 = vpop.f32.mrf.mxu0 }
 0x15d   : > { %v1617_v40 = vpop.f32.mrf.mxu1  ;;  %v724_v46 = vpop.f32.mrf.mxu0 }
 0x15e   : > { %v3277_v47 = vadd.f32 %v939_v31, %v724_v46 }
 0x15f   : > { %v2671_v42 = vpop.f32.mrf.mxu1  ;;  %v2520_v50 = vpop.f32.mrf.mxu0 }
 0x161   : > { %v1620_v49 = vpop.f32.mrf.mxu1  ;;  %v1307_v55 = vpop.f32.mrf.mxu0 }
 0x162   : > { %v1442_v57 = vadd.f32 %v1307_v55, %v3135_v12 }
 0x163   : > { %v2672_v54 = vpop.f32.mrf.mxu1  ;;  %v2599_v62 = vpop.f32.mrf.mxu0 }
 0x164   : > { %v1752_v1 = vadd.f32 %v1617_v40, %v1442_v57 }
 0x165   : > { %v1625_v58 = vpop.f32.mrf.mxu1  ;;  %v1310_v5 = vpop.f32.mrf.mxu0 }
 0x166   : > { %v1793_v6 = vadd.f32 %v3283_v61, %v1752_v1  ;;  %v1443_v7 = vadd.f32 %v1310_v5, %v3142_v20 }
 0x167   : > { %v2675_v0 = vpop.f32.mrf.mxu1  ;;  %v2600_v14 = vpop.f32.mrf.mxu0 }
 0x168   : > { %v1827_v15 = vmul.f32 0.2, %v1793_v6  ;;  %v1753_v17 = vadd.f32 %v1620_v49, %v1443_v7 }
 0x169   : > { %v1628_v10 = vpop.f32.mrf.mxu1  ;;  %v1315_v18 = vpop.f32.mrf.mxu0 }
 0x16a   : > { %v1861_v21 = vmax.f32 %v1793_v6, %v1827_v15  ;;  %v1794_v25 = vadd.f32 %v3283_v61, %v1753_v17  ;;  %v1444_v26 = vadd.f32 %v1315_v18, %v3148_v30 }
 0x16b   : > { %v2676_v12 = vpop.f32.mrf.mxu1  ;;  %v2603_v20 = vpop.f32.mrf.mxu0 }
 0x16c   : > { %v2339_v31 = vpack.c.bf16 %v1861_v21, %v1861_v21  ;;  %v1828_v34 = vmul.f32 0.2, %v1794_v25  ;;  %v1754_v35 = vadd.f32 %v1625_v58, %v1444_v26 }
 0x16d   : > { %v1633_v27 = vpop.f32.mrf.mxu1  ;;  %v1318_v40 = vpop.f32.mrf.mxu0 }
 0x16e   : > { %2032 = vst.msk [vmem:[%s3293_s18] sm:$0xf] %vm2031_vm5, %v2339_v31  ;;  %v1862_v41 = vmax.f32 %v1794_v25, %v1828_v34  ;;  %v1795_v30 = vadd.f32 %v3283_v61, %v1754_v35  ;;  %v1445_v42 = vadd.f32 %v1318_v40, %v3155_v38 }
 0x16f   : > { %v2679_v36 = vpop.f32.mrf.mxu1  ;;  %v2604_v49 = vpop.f32.mrf.mxu0 }
 0x170   : > { %v2340_v50 = vpack.c.bf16 %v1862_v41, %v1862_v41  ;;  %v1829_v54 = vmul.f32 0.2, %v1795_v30  ;;  %v1755_v55 = vadd.f32 %v1628_v10, %v1445_v42 }
 0x171   : > { %v1636_v46 = vpop.f32.mrf.mxu1  ;;  %v1323_v62 = vpop.f32.mrf.mxu0 }
 0x172   : > { %2033 = vst.msk [vmem:[%s3293_s18 + $0x4] sm:$0xf] %vm2031_vm5, %v2340_v50  ;;  %v1863_v58 = vmax.f32 %v1795_v30, %v1829_v54  ;;  %v1796_v1 = vadd.f32 %v3283_v61, %v1755_v55  ;;  %v1446_v0 = vadd.f32 %v1323_v62, %v3161_v48 }
 0x173   : > { %v2680_v57 = vpop.f32.mrf.mxu1  ;;  %v2607_v6 = vpop.f32.mrf.mxu0 }
 0x174   : > { %v2341_v7 = vpack.c.bf16 %v1863_v58, %v1863_v58  ;;  %v1830_v38 = vmul.f32 0.2, %v1796_v1  ;;  %v1756_v14 = vadd.f32 %v1633_v27, %v1446_v0 }
 0x175   : > { %v1641_v5 = vpop.f32.mrf.mxu1  ;;  %v1326_v17 = vpop.f32.mrf.mxu0 }
 0x176   : > { %2034 = vst.msk [vmem:[%s3293_s18 + $0x8] sm:$0xf] %vm2031_vm5, %v2341_v7  ;;  %v1864_v10 = vmax.f32 %v1796_v1, %v1830_v38  ;;  %v1797_v12 = vadd.f32 %v3283_v61, %v1756_v14  ;;  %v1447_v18 = vadd.f32 %v1326_v17, %v3168_v56 }
 0x177   : > { %v2683_v15 = vpop.f32.mrf.mxu1  ;;  %v2608_v25 = vpop.f32.mrf.mxu0 }
 0x178   : > { %v2342_v26 = vpack.c.bf16 %v1864_v10, %v1864_v10  ;;  %v1831_v48 = vmul.f32 0.2, %v1797_v12  ;;  %v1757_v20 = vadd.f32 %v1636_v46, %v1447_v18 }
 0x179   : > { %v1644_v21 = vpop.f32.mrf.mxu1  ;;  %v1331_v34 = vpop.f32.mrf.mxu0 }
 0x17a   : > { %2035 = vst.msk [vmem:[%s3293_s18 + $0xc] sm:$0xf] %vm2031_vm5, %v2342_v26  ;;  %v1865_v27 = vmax.f32 %v1797_v12, %v1831_v48  ;;  %v1798_v35 = vadd.f32 %v3283_v61, %v1757_v20  ;;  %v1448_v36 = vadd.f32 %v1331_v34, %v3174_v3 }
 0x17b   : > { %v2684_v31 = vpop.f32.mrf.mxu1  ;;  %v2611_v41 = vpop.f32.mrf.mxu0 }
 0x17c   : > { %v2343_v30 = vpack.c.bf16 %v1865_v27, %v1865_v27  ;;  %v1832_v56 = vmul.f32 0.2, %v1798_v35  ;;  %v1758_v42 = vadd.f32 %v1641_v5, %v1448_v36 }
 0x17d   : > { %v1649_v40 = vpop.f32.mrf.mxu1  ;;  %v1334_v50 = vpop.f32.mrf.mxu0 }
 0x17e   : > { %2036 = vst.msk [vmem:[%s3293_s18 + $0x10] sm:$0xf] %vm2031_vm5, %v2343_v30  ;;  %v1866_v46 = vmax.f32 %v1798_v35, %v1832_v56  ;;  %v1799_v54 = vadd.f32 %v3283_v61, %v1758_v42  ;;  %v1449_v55 = vadd.f32 %v1334_v50, %v3181_v11 }
 0x17f   : > { %v2687_v49 = vpop.f32.mrf.mxu1  ;;  %v2612_v62 = vpop.f32.mrf.mxu0 }
 0x180   : > { %v2344_v58 = vpack.c.bf16 %v1866_v46, %v1866_v46  ;;  %v1833_v3 = vmul.f32 0.2, %v1799_v54  ;;  %v1759_v1 = vadd.f32 %v1644_v21, %v1449_v55 }
 0x181   : > { %v1652_v57 = vpop.f32.mrf.mxu1  ;;  %v1339_v6 = vpop.f32.mrf.mxu0 }
 0x182   : > { %2037 = vst.msk [vmem:[%s3293_s18 + $0x14] sm:$0xf] %vm2031_vm5, %v2344_v58  ;;  %v1867_v5 = vmax.f32 %v1799_v54, %v1833_v3  ;;  %v1800_v7 = vadd.f32 %v3283_v61, %v1759_v1  ;;  %v1450_v38 = vadd.f32 %v1339_v6, %v3187_v23 }
 0x183   : > { %v2688_v0 = vpop.f32.mrf.mxu1  ;;  %v2615_v15 = vpop.f32.mrf.mxu0 }
 0x184   : > { %v2345_v17 = vpack.c.bf16 %v1867_v5, %v1867_v5  ;;  %v1834_v11 = vmul.f32 0.2, %v1800_v7  ;;  %v1760_v10 = vadd.f32 %v1649_v40, %v1450_v38 }
 0x185   : > { %v1657_v14 = vpop.f32.mrf.mxu1  ;;  %v1342_v18 = vpop.f32.mrf.mxu0 }
 0x186   : > { %2038 = vst.msk [vmem:[%s3293_s18 + $0x18] sm:$0xf] %vm2031_vm5, %v2345_v17  ;;  %v1868_v21 = vmax.f32 %v1800_v7, %v1834_v11  ;;  %v1801_v25 = vadd.f32 %v3283_v61, %v1760_v10  ;;  %v1451_v26 = vadd.f32 %v1342_v18, %v3194_v32 }
 0x187   : > { %v2691_v12 = vpop.f32.mrf.mxu1  ;;  %v2616_v20 = vpop.f32.mrf.mxu0 }
 0x188   : > { %v2346_v31 = vpack.c.bf16 %v1868_v21, %v1868_v21  ;;  %v1835_v23 = vmul.f32 0.2, %v1801_v25  ;;  %v1761_v34 = vadd.f32 %v1652_v57, %v1451_v26 }
 0x189   : > { %v1660_v48 = vpop.f32.mrf.mxu1  ;;  %v1347_v35 = vpop.f32.mrf.mxu0 }
 0x18a   : > { %2039 = vst.msk [vmem:[%s3293_s18 + $0x1c] sm:$0xf] %vm2031_vm5, %v2346_v31  ;;  %v1869_v36 = vmax.f32 %v1801_v25, %v1835_v23  ;;  %v1802_v40 = vadd.f32 %v3283_v61, %v1761_v34  ;;  %v1452_v41 = vadd.f32 %v1347_v35, %v3200_v43 }
 0x18b   : > { %v2692_v27 = vpop.f32.mrf.mxu1  ;;  %v2619_v56 = vpop.f32.mrf.mxu0 }
 0x18c   : > { %v2347_v42 = vpack.c.bf16 %v1869_v36, %v1869_v36  ;;  %v1836_v32 = vmul.f32 0.2, %v1802_v40  ;;  %v1762_v49 = vadd.f32 %v1657_v14, %v1452_v41 }
 0x18d   : > { %v1665_v30 = vpop.f32.mrf.mxu1  ;;  %v1350_v46 = vpop.f32.mrf.mxu0 }
 0x18e   : > { %2040 = vst.msk [vmem:[%s3293_s18 + $0x20] sm:$0xf] %vm2031_vm5, %v2347_v42  ;;  %v1870_v54 = vmax.f32 %v1802_v40, %v1836_v32  ;;  %v1803_v55 = vadd.f32 %v3283_v61, %v1762_v49  ;;  %v1453_v57 = vadd.f32 %v1350_v46, %v3207_v52 }
 0x18f   : > { %v2695_v50 = vpop.f32.mrf.mxu1  ;;  %v2620_v58 = vpop.f32.mrf.mxu0 }
 0x190   : > { %v2348_v3 = vpack.c.bf16 %v1870_v54, %v1870_v54  ;;  %v1837_v43 = vmul.f32 0.2, %v1803_v55  ;;  %v1763_v1 = vadd.f32 %v1660_v48, %v1453_v57 }
 0x191   : > { %v1668_v62 = vpop.f32.mrf.mxu1  ;;  %v1355_v6 = vpop.f32.mrf.mxu0 }
 0x192   : > { %2041 = vst.msk [vmem:[%s3293_s18 + $0x24] sm:$0xf] %vm2031_vm5, %v2348_v3  ;;  %v1871_v5 = vmax.f32 %v1803_v55, %v1837_v43  ;;  %v1804_v7 = vadd.f32 %v3283_v61, %v1763_v1  ;;  %v1454_v38 = vadd.f32 %v1355_v6, %v3213_v63 }
 0x193   : > { %v2696_v0 = vpop.f32.mrf.mxu1  ;;  %v2623_v15 = vpop.f32.mrf.mxu0 }
 0x194   : > { %v2349_v17 = vpack.c.bf16 %v1871_v5, %v1871_v5  ;;  %v1838_v52 = vmul.f32 0.2, %v1804_v7  ;;  %v1764_v11 = vadd.f32 %v1665_v30, %v1454_v38 }
 0x195   : > { %v1673_v14 = vpop.f32.mrf.mxu1  ;;  %v1358_v12 = vpop.f32.mrf.mxu0 }
 0x196   : > { %2042 = vst.msk [vmem:[%s3293_s18 + $0x28] sm:$0xf] %vm2031_vm5, %v2349_v17  ;;  %v1872_v18 = vmax.f32 %v1804_v7, %v1838_v52  ;;  %v1805_v21 = vadd.f32 %v3283_v61, %v1764_v11  ;;  %v1455_v25 = vadd.f32 %v1358_v12, %v3220_v9 }
 0x197   : > { %v2699_v10 = vpop.f32.mrf.mxu1  ;;  %v2624_v48 = vpop.f32.mrf.mxu0 }
 0x198   : > { %v2350_v20 = vpack.c.bf16 %v1872_v18, %v1872_v18  ;;  %v1839_v63 = vmul.f32 0.2, %v1805_v21  ;;  %v1765_v31 = vadd.f32 %v1668_v62, %v1455_v25 }
 0x199   : > { %v1676_v26 = vpop.f32.mrf.mxu1  ;;  %v1363_v34 = vpop.f32.mrf.mxu0 }
 0x19a   : > { %2043 = vst.msk [vmem:[%s3293_s18 + $0x2c] sm:$0xf] %vm2031_vm5, %v2350_v20  ;;  %v1873_v27 = vmax.f32 %v1805_v21, %v1839_v63  ;;  %v1806_v35 = vadd.f32 %v3283_v61, %v1765_v31  ;;  %v1456_v36 = vadd.f32 %v1363_v34, %v3226_v22 }
 0x19b   : > { %v2700_v23 = vpop.f32.mrf.mxu1  ;;  %v2627_v41 = vpop.f32.mrf.mxu0 }
 0x19c   : > { %v2351_v30 = vpack.c.bf16 %v1873_v27, %v1873_v27  ;;  %v1840_v9 = vmul.f32 0.2, %v1806_v35  ;;  %v1766_v56 = vadd.f32 %v1673_v14, %v1456_v36 }
 0x19d   : > { %v1681_v40 = vpop.f32.mrf.mxu1  ;;  %v1366_v32 = vpop.f32.mrf.mxu0 }
 0x19e   : > { %2044 = vst.msk [vmem:[%s3293_s18 + $0x30] sm:$0xf] %vm2031_vm5, %v2351_v30  ;;  %v1874_v49 = vmax.f32 %v1806_v35, %v1840_v9  ;;  %v1807_v50 = vadd.f32 %v3283_v61, %v1766_v56  ;;  %v1457_v46 = vadd.f32 %v1366_v32, %v3233_v33 }
 0x19f   : > { %v2703_v42 = vpop.f32.mrf.mxu1  ;;  %v2628_v55 = vpop.f32.mrf.mxu0 }
 0x1a0   : > { %v2352_v57 = vpack.c.bf16 %v1874_v49, %v1874_v49  ;;  %v1841_v22 = vmul.f32 0.2, %v1807_v50  ;;  %v1767_v62 = vadd.f32 %v1676_v26, %v1457_v46 }
 0x1a1   : > { %v1684_v54 = vpop.f32.mrf.mxu1  ;;  %v1371_v3 = vpop.f32.mrf.mxu0 }
 0x1a2   : > { %2045 = vst.msk [vmem:[%s3293_s18 + $0x34] sm:$0xf] %vm2031_vm5, %v2352_v57  ;;  %v1875_v43 = vmax.f32 %v1807_v50, %v1841_v22  ;;  %v1808_v1 = vadd.f32 %v3283_v61, %v1767_v62  ;;  %v1458_v0 = vadd.f32 %v1371_v3, %v3238_v44 }
 0x1a3   : > { %v2704_v58 = vpop.f32.mrf.mxu1  ;;  %v2631_v5 = vpop.f32.mrf.mxu0 }
 0x1a4   : > { %v2353_v7 = vpack.c.bf16 %v1875_v43, %v1875_v43  ;;  %v1842_v33 = vmul.f32 0.2, %v1808_v1  ;;  %v1768_v38 = vadd.f32 %v1681_v40, %v1458_v0 }
 0x1a5   : > { %v1689_v6 = vpop.f32.mrf.mxu1  ;;  %v1374_v15 = vpop.f32.mrf.mxu0 }
 0x1a6   : > { %2046 = vst.msk [vmem:[%s3293_s18 + $0x38] sm:$0xf] %vm2031_vm5, %v2353_v7  ;;  %v1876_v17 = vmax.f32 %v1808_v1, %v1842_v33  ;;  %v1809_v52 = vadd.f32 %v3283_v61, %v1768_v38  ;;  %v1459_v11 = vadd.f32 %v1374_v15, %v3243_v53 }
 0x1a7   : > { %v2707_v14 = vpop.f32.mrf.mxu1  ;;  %v2632_v12 = vpop.f32.mrf.mxu0 }
 0x1a8   : > { %v2354_v18 = vpack.c.bf16 %v1876_v17, %v1876_v17  ;;  %v1843_v44 = vmul.f32 0.2, %v1809_v52  ;;  %v1769_v21 = vadd.f32 %v1684_v54, %v1459_v11 }
 0x1a9   : > { %v1692_v10 = vpop.f32.mrf.mxu1  ;;  %v1379_v26 = vpop.f32.mrf.mxu0 }
 0x1aa   : > { %2047 = vst.msk [vmem:[%s3293_s18 + $0x3c] sm:$0xf] %vm2031_vm5, %v2354_v18  ;;  %v1877_v48 = vmax.f32 %v1809_v52, %v1843_v44  ;;  %v1810_v20 = vadd.f32 %v3283_v61, %v1769_v21  ;;  %v1460_v63 = vadd.f32 %v1379_v26, %v3247_v60 }
 0x1ab   : > { %v2708_v25 = vpop.f32.mrf.mxu1  ;;  %v2635_v23 = vpop.f32.mrf.mxu0 }
 0x1ac   : > { %v2355_v34 = vpack.c.bf16 %v1877_v48, %v1877_v48  ;;  %v1844_v53 = vmul.f32 0.2, %v1810_v20  ;;  %v1770_v27 = vadd.f32 %v1689_v6, %v1460_v63 }
 0x1ad   : > { %v1697_v31 = vpop.f32.mrf.mxu1  ;;  %v1382_v36 = vpop.f32.mrf.mxu0 }
 0x1ae   : > { %2048 = vst.msk [vmem:[%s3293_s18 + $0x40] sm:$0xf] %vm2031_vm5, %v2355_v34  ;;  %v1878_v40 = vmax.f32 %v1810_v20, %v1844_v53  ;;  %v1811_v41 = vadd.f32 %v3283_v61, %v1770_v27  ;;  %v1461_v30 = vadd.f32 %v1382_v36, %v3249_v2 }
 0x1af   : > { %v2711_v35 = vpop.f32.mrf.mxu1  ;;  %v2636_v56 = vpop.f32.mrf.mxu0 }
 0x1b0   : > { %v2356_v42 = vpack.c.bf16 %v1878_v40, %v1878_v40  ;;  %v1845_v60 = vmul.f32 0.2, %v1811_v41  ;;  %v1771_v32 = vadd.f32 %v1692_v10, %v1461_v30 }
 0x1b1   : > { %v1700_v9 = vpop.f32.mrf.mxu1  ;;  %v1387_v50 = vpop.f32.mrf.mxu0 }
 0x1b2   : > { %2049 = vst.msk [vmem:[%s3293_s18 + $0x44] sm:$0xf] %vm2031_vm5, %v2356_v42  ;;  %v1879_v46 = vmax.f32 %v1811_v41, %v1845_v60  ;;  %v1812_v54 = vadd.f32 %v3283_v61, %v1771_v32  ;;  %v1462_v55 = vadd.f32 %v1387_v50, %v3251_v8 }
 0x1b3   : > { %v2712_v49 = vpop.f32.mrf.mxu1  ;;  %v2639_v22 = vpop.f32.mrf.mxu0 }
 0x1b4   : > { %v2357_v62 = vpack.c.bf16 %v1879_v46, %v1879_v46  ;;  %v1846_v2 = vmul.f32 0.2, %v1812_v54  ;;  %v1772_v58 = vadd.f32 %v1697_v31, %v1462_v55 }
 0x1b5   : > { %v1705_v57 = vpop.f32.mrf.mxu1  ;;  %v1390_v43 = vpop.f32.mrf.mxu0 }
 0x1b6   : > { %2050 = vst.msk [vmem:[%s3293_s18 + $0x48] sm:$0xf] %vm2031_vm5, %v2357_v62  ;;  %v1880_v1 = vmax.f32 %v1812_v54, %v1846_v2  ;;  %v1813_v0 = vadd.f32 %v3283_v61, %v1772_v58  ;;  %v1463_v6 = vadd.f32 %v1390_v43, %v3253_v16 }
 0x1b7   : > { %v2715_v3 = vpop.f32.mrf.mxu1  ;;  %v2640_v7 = vpop.f32.mrf.mxu0 }
 0x1b8   : > { %v2358_v33 = vpack.c.bf16 %v1880_v1, %v1880_v1  ;;  %v1847_v8 = vmul.f32 0.2, %v1813_v0  ;;  %v1773_v38 = vadd.f32 %v1700_v9, %v1463_v6 }
 0x1b9   : > { %v1708_v5 = vpop.f32.mrf.mxu1  ;;  %v1395_v15 = vpop.f32.mrf.mxu0 }
 0x1ba   : > { %2051 = vst.msk [vmem:[%s3293_s18 + $0x4c] sm:$0xf] %vm2031_vm5, %v2358_v33  ;;  %v1881_v17 = vmax.f32 %v1813_v0, %v1847_v8  ;;  %v1814_v52 = vadd.f32 %v3283_v61, %v1773_v38  ;;  %v1464_v11 = vadd.f32 %v1395_v15, %v3255_v24 }
 0x1bb   : > { %v2716_v14 = vpop.f32.mrf.mxu1  ;;  %v2643_v12 = vpop.f32.mrf.mxu0 }
 0x1bc   : > { %v2359_v18 = vpack.c.bf16 %v1881_v17, %v1881_v17  ;;  %v1848_v16 = vmul.f32 0.2, %v1814_v52  ;;  %v1774_v44 = vadd.f32 %v1705_v57, %v1464_v11 }
 0x1bd   : > { %v1713_v10 = vpop.f32.mrf.mxu1  ;;  %v1398_v25 = vpop.f32.mrf.mxu0 }
 0x1be   : > { %2052 = vst.msk [vmem:[%s3293_s18 + $0x50] sm:$0xf] %vm2031_vm5, %v2359_v18  ;;  %v1882_v26 = vmax.f32 %v1814_v52, %v1848_v16  ;;  %v1815_v48 = vadd.f32 %v3283_v61, %v1774_v44  ;;  %v1465_v20 = vadd.f32 %v1398_v25, %v3257_v29 }
 0x1bf   : > { %v2719_v21 = vpop.f32.mrf.mxu1  ;;  %v2644_v31 = vpop.f32.mrf.mxu0 }
 0x1c0   : > { %v2360_v23 = vpack.c.bf16 %v1882_v26, %v1882_v26  ;;  %v1849_v24 = vmul.f32 0.2, %v1815_v48  ;;  %v1775_v34 = vadd.f32 %v1708_v5, %v1465_v20 }
 0x1c1   : > { %v1716_v63 = vpop.f32.mrf.mxu1  ;;  %v1403_v27 = vpop.f32.mrf.mxu0 }
 0x1c2   : > { %2053 = vst.msk [vmem:[%s3293_s18 + $0x54] sm:$0xf] %vm2031_vm5, %v2360_v23  ;;  %v1883_v35 = vmax.f32 %v1815_v48, %v1849_v24  ;;  %v1816_v36 = vadd.f32 %v3283_v61, %v1775_v34  ;;  %v1466_v40 = vadd.f32 %v1403_v27, %v3259_v37 }
 0x1c3   : > { %v2720_v53 = vpop.f32.mrf.mxu1  ;;  %v2647_v30 = vpop.f32.mrf.mxu0 }
 0x1c4   : > { %v2361_v9 = vpack.c.bf16 %v1883_v35, %v1883_v35  ;;  %v1850_v29 = vmul.f32 0.2, %v1816_v36  ;;  %v1776_v56 = vadd.f32 %v1713_v10, %v1466_v40 }
 0x1c5   : > { %v1721_v41 = vpop.f32.mrf.mxu1  ;;  %v1406_v60 = vpop.f32.mrf.mxu0 }
 0x1c6   : > { %2054 = vst.msk [vmem:[%s3293_s18 + $0x58] sm:$0xf] %vm2031_vm5, %v2361_v9  ;;  %v1884_v32 = vmax.f32 %v1816_v36, %v1850_v29  ;;  %v1817_v49 = vadd.f32 %v3283_v61, %v1776_v56  ;;  %v1467_v50 = vadd.f32 %v1406_v60, %v3261_v45 }
 0x1c7   : > { %v2723_v42 = vpop.f32.mrf.mxu1  ;;  %v2648_v54 = vpop.f32.mrf.mxu0 }
 0x1c8   : > { %v2362_v55 = vpack.c.bf16 %v1884_v32, %v1884_v32  ;;  %v1851_v37 = vmul.f32 0.2, %v1817_v49  ;;  %v1777_v57 = vadd.f32 %v1716_v63, %v1467_v50 }
 0x1c9   : > { %v1724_v46 = vpop.f32.mrf.mxu1  ;;  %v1411_v62 = vpop.f32.mrf.mxu0 }
 0x1ca   : > { %2055 = vst.msk [vmem:[%s3293_s18 + $0x5c] sm:$0xf] %vm2031_vm5, %v2362_v55  ;;  %v1885_v2 = vmax.f32 %v1817_v49, %v1851_v37  ;;  %v1818_v58 = vadd.f32 %v3283_v61, %v1777_v57  ;;  %v1468_v3 = vadd.f32 %v1411_v62, %v3263_v51 }
 0x1cb   : > { %v2724_v22 = vpop.f32.mrf.mxu1  ;;  %v2651_v1 = vpop.f32.mrf.mxu0 }
 0x1cc   : > { %v2363_v0 = vpack.c.bf16 %v1885_v2, %v1885_v2  ;;  %v1852_v45 = vmul.f32 0.2, %v1818_v58  ;;  %v1778_v6 = vadd.f32 %v1721_v41, %v1468_v3 }
 0x1cd   : > { %v1729_v43 = vpop.f32.mrf.mxu1  ;;  %v1414_v7 = vpop.f32.mrf.mxu0 }
 0x1ce   : > { %2056 = vst.msk [vmem:[%s3293_s18 + $0x60] sm:$0xf] %vm2031_vm5, %v2363_v0  ;;  %v1886_v33 = vmax.f32 %v1818_v58, %v1852_v45  ;;  %v1819_v8 = vadd.f32 %v3283_v61, %v1778_v6  ;;  %v1469_v38 = vadd.f32 %v1414_v7, %v3265_v59 }
 0x1cf   : > { %v2727_v5 = vpop.f32.mrf.mxu1  ;;  %v2652_v15 = vpop.f32.mrf.mxu0 }
 0x1d0   : > { %v2364_v17 = vpack.c.bf16 %v1886_v33, %v1886_v33  ;;  %v1853_v51 = vmul.f32 0.2, %v1819_v8  ;;  %v1779_v52 = vadd.f32 %v1724_v46, %v1469_v38 }
 0x1d1   : > { %v1732_v14 = vpop.f32.mrf.mxu1  ;;  %v1419_v10 = vpop.f32.mrf.mxu0 }
 0x1d2   : > { %2057 = vst.msk [vmem:[%s3293_s18 + $0x64] sm:$0xf] %vm2031_vm5, %v2364_v17  ;;  %v1887_v12 = vmax.f32 %v1819_v8, %v1853_v51  ;;  %v1820_v18 = vadd.f32 %v3283_v61, %v1779_v52  ;;  %v1470_v16 = vadd.f32 %v1419_v10, %v3267_v4 }
 0x1d3   : > { %v2728_v11 = vpop.f32.mrf.mxu1  ;;  %v2655_v21 = vpop.f32.mrf.mxu0 }
 0x1d4   : > { %v2365_v25 = vpack.c.bf16 %v1887_v12, %v1887_v12  ;;  %v1854_v59 = vmul.f32 0.2, %v1820_v18  ;;  %v1780_v26 = vadd.f32 %v1729_v43, %v1470_v16 }
 0x1d5   : > { %v1737_v44 = vpop.f32.mrf.mxu1  ;;  %v1422_v20 = vpop.f32.mrf.mxu0 }
 0x1d6   : > { %2058 = vst.msk [vmem:[%s3293_s18 + $0x68] sm:$0xf] %vm2031_vm5, %v2365_v25  ;;  %v1888_v63 = vmax.f32 %v1820_v18, %v1854_v59  ;;  %v1821_v31 = vadd.f32 %v3283_v61, %v1780_v26  ;;  %v1471_v23 = vadd.f32 %v1422_v20, %v3269_v13 }
 0x1d7   : > { %v2731_v48 = vpop.f32.mrf.mxu1  ;;  %v2656_v34 = vpop.f32.mrf.mxu0 }
 0x1d8   : > { %v2366_v53 = vpack.c.bf16 %v1888_v63, %v1888_v63  ;;  %v1855_v4 = vmul.f32 0.2, %v1821_v31  ;;  %v1781_v27 = vadd.f32 %v1732_v14, %v1471_v23 }
 0x1d9   : > { %v1740_v24 = vpop.f32.mrf.mxu1  ;;  %v1427_v36 = vpop.f32.mrf.mxu0 }
 0x1da   : > { %2059 = vst.msk [vmem:[%s3293_s18 + $0x6c] sm:$0xf] %vm2031_vm5, %v2366_v53  ;;  %v1889_v40 = vmax.f32 %v1821_v31, %v1855_v4  ;;  %v1822_v41 = vadd.f32 %v3283_v61, %v1781_v27  ;;  %v1472_v30 = vadd.f32 %v1427_v36, %v3271_v19 }
 0x1db   : > { %v2732_v35 = vpop.f32.mrf.mxu1  ;;  %v2659_v29 = vpop.f32.mrf.mxu0 }
 0x1dc   : > { %v2367_v56 = vpack.c.bf16 %v1889_v40, %v1889_v40  ;;  %v1856_v13 = vmul.f32 0.2, %v1822_v41  ;;  %v1782_v42 = vadd.f32 %v1737_v44, %v1472_v30 }
 0x1dd   : > { %v1745_v9 = vpop.f32.mrf.mxu1  ;;  %v1430_v32 = vpop.f32.mrf.mxu0 }
 0x1de   : > { %2060 = vst.msk [vmem:[%s3293_s18 + $0x70] sm:$0xf] %vm2031_vm5, %v2367_v56  ;;  %v1890_v49 = vmax.f32 %v1822_v41, %v1856_v13  ;;  %v1823_v50 = vadd.f32 %v3283_v61, %v1782_v42  ;;  %v1473_v46 = vadd.f32 %v1430_v32, %v3273_v28 }
 0x1df   : > { %v2735_v60 = vpop.f32.mrf.mxu1  ;;  %v2660_v55 = vpop.f32.mrf.mxu0 }
 0x1e0   : > { %v2368_v37 = vpack.c.bf16 %v1890_v49, %v1890_v49  ;;  %v1857_v19 = vmul.f32 0.2, %v1823_v50  ;;  %v1783_v57 = vadd.f32 %v1740_v24, %v1473_v46 }
 0x1e1   : > { %v1748_v54 = vpop.f32.mrf.mxu1  ;;  %v1435_v62 = vpop.f32.mrf.mxu0 }
 0x1e2   : > { %2061 = vst.msk [vmem:[%s3293_s18 + $0x74] sm:$0xf] %vm2031_vm5, %v2368_v37  ;;  %v1891_v2 = vmax.f32 %v1823_v50, %v1857_v19  ;;  %v1824_v58 = vadd.f32 %v3283_v61, %v1783_v57  ;;  %v1474_v3 = vadd.f32 %v1435_v62, %v3275_v39 }
 0x1e3   : > { %v2736_v22 = vpop.f32.mrf.mxu1  ;;  %v2663_v43 = vpop.f32.mrf.mxu0 }
 0x1e4   : > { %v2369_v1 = vpack.c.bf16 %v1891_v2, %v1891_v2  ;;  %v1858_v0 = vmul.f32 0.2, %v1824_v58  ;;  %v1784_v28 = vadd.f32 %v1745_v9, %v1474_v3 }
 0x1e5   : > { %v1438_v45 = vpop.f32.mrf.mxu0 }
 0x1e6   : > { %2062 = vst.msk [vmem:[%s3293_s18 + $0x78] sm:$0xf] %vm2031_vm5, %v2369_v1  ;;  %v1892_v6 = vmax.f32 %v1824_v58, %v1858_v0  ;;  %v1825_v5 = vadd.f32 %v3283_v61, %v1784_v28  ;;  %v1475_v7 = vadd.f32 %v1438_v45, %v3277_v47 }
 0x1e7   : > { %v2664_v33 = vpop.f32.mrf.mxu0 }
 0x1e8   : > { %v2370_v8 = vpack.c.bf16 %v1892_v6, %v1892_v6  ;;  %v1859_v38 = vmul.f32 0.2, %v1825_v5  ;;  %v1785_v14 = vadd.f32 %v1748_v54, %v1475_v7 }
 0x1ea   : > { %2063 = vst.msk [vmem:[%s3293_s18 + $0x7c] sm:$0xf] %vm2031_vm5, %v2370_v8  ;;  %v1893_v39 = vmax.f32 %v1825_v5, %v1859_v38  ;;  %v1826_v15 = vadd.f32 %v3283_v61, %v1785_v14 }
 0x1ec   : > { %v2371_v17 = vpack.c.bf16 %v1893_v39, %v1893_v39  ;;  %v1860_v51 = vmul.f32 0.2, %v1826_v15 }
 0x1ee   : > { %2064 = vst.msk [vmem:[%s3293_s18 + $0x80] sm:$0xf] %vm2031_vm5, %v2371_v17  ;;  %v1894_v52 = vmax.f32 %v1826_v15, %v1860_v51 }
 0x1f0   : > { %v2372_v11 = vpack.c.bf16 %v1894_v52, %v1894_v52 }
 0x1f2   : > { %2065 = vst.msk [vmem:[%s3293_s18 + $0x84] sm:$0xf] %vm2031_vm5, %v2372_v11 }
 0x1f3 PF: > { %s13_s14 = sadd.s32 1, %s2832_s14   ;;  %s3439_s12 = smov %s2828_s13 }
 0x1f4   : > { %p10_p5 = scmp.ge.s32.totalorder %s13_s14, 4   ;;  %s3440_s13 = smov %s3442_s15 }
 0x1f6   :  { %12 = sbr.rel (!%p10_p5) target bundleno = 2 (0x2), region = 71 }

</bundles_post_ra>
